<compile_context>
chip_gen: v7x
topology: tpu7x:2x2x1
jax: 0.10.0
libtpu: 0.0.40
codegen_flags: <defaults>
</compile_context>

<pallas_src>
import functools

import jax
import jax.numpy as jnp
import numpy as np
from jax.experimental import pallas as pl
from jax.experimental.pallas import tpu as pltpu

BN_EPS = 1e-5


def _hardswish(x):
    # PyTorch nn.Hardswish: x * relu6(x + 3) / 6
    return x * jnp.clip(x + 3.0, 0.0, 6.0) * (1.0 / 6.0)


def _fold_bn(gamma, beta, mean, var):
    scale = gamma / jnp.sqrt(var + BN_EPS)
    bias = beta - mean * scale
    return scale, bias


def _shift_lanes(x, s):
    """out[..., p] = x[..., (p + s) % n]  (static circular shift along lanes)."""
    n = x.shape[-1]
    s = s % n
    if s == 0:
        return x
    # TODO(synk): switch to pltpu.roll (XLU slot, cheaper than slice+concat)
    # once the roll direction is verified on-device; this form is unambiguous.
    return jnp.concatenate([x[..., s:], x[..., :s]], axis=-1)


def _tap_masks(H, W):
    """(25, H*W) f32 validity mask per 5x5 tap (implements the zero padding)."""
    hh = np.arange(H)[:, None]
    ww = np.arange(W)[None, :]
    rows = []
    for dh in range(5):
        for dw in range(5):
            oh, ow = dh - 2, dw - 2
            valid = ((hh + oh >= 0) & (hh + oh < H) &
                     (ww + ow >= 0) & (ww + ow < W))
            rows.append(valid.reshape(-1))
    return jnp.asarray(np.stack(rows).astype(np.float32))


# ---------------------------------------------------------------------------
# Fused GhostConv kernel: 1x1 conv (MXU) + BN + hardswish -> depthwise 5x5
# conv (25 lane-shift FMAs in f32) + BN + hardswish -> both channel halves of
# the concatenated output written from the same grid step.
# ---------------------------------------------------------------------------
def _ghost_kernel(x_ref, w1_ref, s1_ref, b1_ref, w2_ref, s2_ref, b2_ref,
                  m_ref, o_ref, *, W):
    # x_ref : (1, c1, H*W)    input image, spatial on the lane axis
    # w1_ref: (cb, c1)        1x1 conv weight rows for this channel block
    # s1/b1 : (cb, 1)  f32    folded BN affine of cv1
    # w2_ref: (cb, 25) f32    depthwise 5x5 taps
    # s2/b2 : (cb, 1)  f32    folded BN affine of cv2
    # m_ref : (25, H*W) f32   per-tap boundary (zero-pad) mask
    # o_ref : (1, 2, cb, H*W) [:,0]=y half, [:,1]=z half of the concat
    x = x_ref[0]                                                  # (c1, HW)

    # --- cv1: pointwise conv as an MXU matmul, f32 accumulate, fused BN + act.
    acc1 = jnp.dot(w1_ref[...], x, preferred_element_type=jnp.float32)
    y = _hardswish(acc1 * s1_ref[...] + b1_ref[...])              # (cb, HW) f32

    # --- cv2: depthwise 5x5, pad=2, on the VMEM-resident y (f32 accumulate).
    w2 = w2_ref[...]                                              # (cb, 25)
    acc2 = jnp.zeros_like(y)
    for dh in range(5):
        for dw in range(5):
            k = dh * 5 + dw
            shift = (dh - 2) * W + (dw - 2)
            tap = _shift_lanes(y, shift) * m_ref[k:k + 1, :]      # masked window
            acc2 = acc2 + tap * w2[:, k:k + 1]
    z = _hardswish(acc2 * s2_ref[...] + b2_ref[...])

    # --- concat([y, z], channel) written directly as the two halves.
    o_ref[0, 0] = y.astype(o_ref.dtype)
    o_ref[0, 1] = z.astype(o_ref.dtype)


def ghost_conv(x_nchw, params):
    """GhostConv forward. x_nchw: (N, c1, H, W) -> (N, 2*c_, H, W)."""
    N, c1, H, W = x_nchw.shape
    HW = H * W
    act_dtype = x_nchw.dtype
    isz = jnp.dtype(act_dtype).itemsize

    w1 = params["w1"]                                   # (c_, c1, 1, 1) OIHW
    c_ = w1.shape[0]
    w1_mat = w1[:, :, 0, 0].astype(act_dtype)           # (c_, c1)
    s1, b1 = _fold_bn(params["g1"], params["b1"], params["m1"], params["v1"])
    w2_mat = params["w2"][:, 0].reshape(c_, 25).astype(jnp.float32)   # (c_, 25)
    s2, b2 = _fold_bn(params["g2"], params["b2"], params["m2"], params["v2"])
    s1 = s1.astype(jnp.float32)[:, None]
    b1 = b1.astype(jnp.float32)[:, None]
    s2 = s2.astype(jnp.float32)[:, None]
    b2 = b2.astype(jnp.float32)[:, None]

    # Channel-block tiling bounds VMEM for wide layers; the depthwise conv is
    # per-channel so channel blocks need no halo.  Single block when c_ does
    # not divide evenly -> no tail masking needed.
    cb = 128 if (c_ > 128 and c_ % 128 == 0) else c_
    n_cb = c_ // cb

    masks = _tap_masks(H, W)                 # (25, HW) f32, DMA'd once
    x_flat = x_nchw.reshape(N, c1, HW)       # free reshape, spatial on lanes

    kernel = functools.partial(_ghost_kernel, W=W)

    # VMEM sizing: double-buffered x / out blocks plus the small constants.
    block_bytes = (c1 * HW * isz             # x block
                   + 2 * cb * HW * isz       # out block
                   + 25 * HW * 4             # tap masks
                   + cb * (c1 * isz + 25 * 4 + 4 * 4))
    vmem_limit = int(min(64 * 1024 * 1024,
                         max(16 * 1024 * 1024, 4 * block_bytes + (2 << 20))))

    cost = pl.CostEstimate(
        flops=int(2 * N * c_ * c1 * HW + 60 * N * c_ * HW),
        transcendentals=0,
        bytes_accessed=int(N * (c1 + 2 * c_) * HW * isz + 25 * HW * 4
                           + c_ * (c1 * isz + 29 * 4)),
    )

    out = pl.pallas_call(
        kernel,
        out_shape=jax.ShapeDtypeStruct((N, 2, c_, HW), act_dtype),
        grid=(N, n_cb),
        in_specs=[
            pl.BlockSpec((1, c1, HW), lambda n, j: (n, 0, 0)),   # x (reused over j)
            pl.BlockSpec((cb, c1), lambda n, j: (j, 0)),         # w1
            pl.BlockSpec((cb, 1), lambda n, j: (j, 0)),          # s1
            pl.BlockSpec((cb, 1), lambda n, j: (j, 0)),          # b1
            pl.BlockSpec((cb, 25), lambda n, j: (j, 0)),         # w2
            pl.BlockSpec((cb, 1), lambda n, j: (j, 0)),          # s2
            pl.BlockSpec((cb, 1), lambda n, j: (j, 0)),          # b2
            pl.BlockSpec((25, HW), lambda n, j: (0, 0)),         # tap masks
        ],
        out_specs=pl.BlockSpec((1, 2, cb, HW), lambda n, j: (n, 0, j, 0)),
        compiler_params=pltpu.CompilerParams(
            dimension_semantics=("parallel", "arbitrary"),
            vmem_limit_bytes=vmem_limit),
        cost_estimate=cost,
    )(x_flat, w1_mat, s1, b1, w2_mat, s2, b2, masks)

    # torch.cat([y, z], dim=1) == free reshape of the (N, 2, c_, H*W) result.
    # TODO(synk): for very large feature maps (c1*H*W blocks beyond VMEM) add a
    # spatially tiled variant with a 4-row halo; VMEM is currently bounded via
    # channel blocks only.
    return out.reshape(N, 2 * c_, H, W)


# ---------------------------------------------------------------------------
# Pure-JAX reference (lax conv) for verification
# ---------------------------------------------------------------------------
def _conv_bn_act_ref(x_nhwc, w_oihw, gamma, beta, mean, var, pad, groups):
    w_hwio = jnp.transpose(w_oihw, (2, 3, 1, 0))
    out = jax.lax.conv_general_dilated(
        x_nhwc, w_hwio, window_strides=(1, 1),
        padding=((pad, pad), (pad, pad)),
        dimension_numbers=("NHWC", "HWIO", "NHWC"),
        feature_group_count=groups)
    scale = gamma / jnp.sqrt(var + BN_EPS)
    out = out * scale + (beta - mean * scale)
    return _hardswish(out)


def ghost_conv_ref(x_nchw, params):
    x = jnp.transpose(x_nchw, (0, 2, 3, 1))
    c_ = params["w1"].shape[0]
    y = _conv_bn_act_ref(x, params["w1"], params["g1"], params["b1"],
                         params["m1"], params["v1"], pad=0, groups=1)
    z = _conv_bn_act_ref(y, params["w2"], params["g2"], params["b2"],
                         params["m2"], params["v2"], pad=2, groups=c_)
    out = jnp.concatenate([y, z], axis=-1)
    return jnp.transpose(out, (0, 3, 1, 2))


# ---------------------------------------------------------------------------
if __name__ == "__main__":
    # GhostConv(c1=4, c2=8, k=1, s=1)  ->  c_ = 4
    N, c1, H, W = 2, 4, 16, 16
    c2 = 8
    c_ = c2 // 2

    key = jax.random.PRNGKey(0)
    ks = jax.random.split(key, 11)
    params = {
        "w1": jax.random.normal(ks[0], (c_, c1, 1, 1), jnp.float32) * 0.2,
        "g1": jax.random.uniform(ks[1], (c_,), jnp.float32, 0.5, 1.5),
        "b1": jax.random.normal(ks[2], (c_,), jnp.float32) * 0.1,
        "m1": jax.random.normal(ks[3], (c_,), jnp.float32) * 0.1,
        "v1": jax.random.uniform(ks[4], (c_,), jnp.float32, 0.5, 1.5),
        "w2": jax.random.normal(ks[5], (c_, 1, 5, 5), jnp.float32) * 0.2,
        "g2": jax.random.uniform(ks[6], (c_,), jnp.float32, 0.5, 1.5),
        "b2": jax.random.normal(ks[7], (c_,), jnp.float32) * 0.1,
        "m2": jax.random.normal(ks[8], (c_,), jnp.float32) * 0.1,
        "v2": jax.random.uniform(ks[9], (c_,), jnp.float32, 0.5, 1.5),
    }
    x = jax.random.normal(ks[10], (N, c1, H, W), jnp.float32)

    # f32 path: tight check against the lax reference.
    out = jax.block_until_ready(ghost_conv(x, params))
    ref = jax.block_until_ready(ghost_conv_ref(x, params))
    assert out.shape == (N, c2, H, W), out.shape
    np.testing.assert_allclose(np.asarray(out), np.asarray(ref),
                               rtol=2e-5, atol=2e-5)

    # bf16 activation / 1x1-weight path (bf16 MXU + halved HBM traffic on
    # v6e/v7x); depthwise accumulate, BN and hardswish stay in f32 in-kernel.
    out_bf16 = jax.block_until_ready(ghost_conv(x.astype(jnp.bfloat16), params))
    np.testing.assert_allclose(np.asarray(out_bf16.astype(jnp.float32)),
                               np.asarray(ref), rtol=6e-2, atol=6e-2)

    print("KERNEL_OK")
</pallas_src>

<mosaic_0001>
module attributes {stable_mosaic.version = 11 : i64} {
  func.func @_ghost_kernel(%arg0: i32, %arg1: i32, %arg2: memref<1x4x256xf32, #tpu.memory_space<vmem>>, %arg3: memref<4x4xf32, #tpu.memory_space<vmem>>, %arg4: memref<4x1xf32, #tpu.memory_space<vmem>>, %arg5: memref<4x1xf32, #tpu.memory_space<vmem>>, %arg6: memref<4x25xf32, #tpu.memory_space<vmem>>, %arg7: memref<4x1xf32, #tpu.memory_space<vmem>>, %arg8: memref<4x1xf32, #tpu.memory_space<vmem>>, %arg9: memref<25x256xf32, #tpu.memory_space<vmem>>, %arg10: memref<1x2x4x256xf32, #tpu.memory_space<vmem>>) attributes {dimension_semantics = [#tpu.dimension_semantics<parallel>, #tpu.dimension_semantics<arbitrary>], iteration_bounds = array<i64: 2, 1>, scalar_prefetch = 0 : i64, scratch_operands = 0 : i64, tpu.core_type = #tpu.core_type<tc>, window_params = [{transform_indices = @transform_0, window_bounds = array<i64: 1, 4, 256>}, {transform_indices = @transform_1, window_bounds = array<i64: 4, 4>}, {transform_indices = @transform_2, window_bounds = array<i64: 4, 1>}, {transform_indices = @transform_3, window_bounds = array<i64: 4, 1>}, {transform_indices = @transform_4, window_bounds = array<i64: 4, 25>}, {transform_indices = @transform_5, window_bounds = array<i64: 4, 1>}, {transform_indices = @transform_6, window_bounds = array<i64: 4, 1>}, {pipeline_mode = #tpu.pipeline_mode<synchronous>, transform_indices = @transform_7, window_bounds = array<i64: 25, 256>}, {transform_indices = @transform_8, window_bounds = array<i64: 1, 2, 4, 256>}]} {
    %c0 = arith.constant 0 : index
    %c0_0 = arith.constant 0 : index
    %c0_1 = arith.constant 0 : index
    %0 = vector.load %arg2[%c0, %c0_0, %c0_1] : memref<1x4x256xf32, #tpu.memory_space<vmem>>, vector<1x4x256xf32>
    %1 = vector.shape_cast %0 : vector<1x4x256xf32> to vector<4x256xf32>
    %c0_2 = arith.constant 0 : index
    %c0_3 = arith.constant 0 : index
    %2 = vector.load %arg3[%c0_2, %c0_3] : memref<4x4xf32, #tpu.memory_space<vmem>>, vector<4x4xf32>
    %cst = arith.constant dense<0.000000e+00> : vector<4x256xf32>
    %3 = tpu.matmul %2, %1, %cst {dimension_numbers = #tpu.dot_dimension_numbers<[1], [0], [0], [1], [0, 0, 1, 1], [], []>} : vector<4x4xf32>, vector<4x256xf32>, vector<4x256xf32> -> vector<4x256xf32>
    %c0_4 = arith.constant 0 : index
    %c0_5 = arith.constant 0 : index
    %4 = vector.load %arg4[%c0_4, %c0_5] : memref<4x1xf32, #tpu.memory_space<vmem>>, vector<4x1xf32>
    %5 = vector.broadcast %4 : vector<4x1xf32> to vector<4x256xf32>
    %6 = arith.mulf %3, %5 : vector<4x256xf32>
    %c0_6 = arith.constant 0 : index
    %c0_7 = arith.constant 0 : index
    %7 = vector.load %arg5[%c0_6, %c0_7] : memref<4x1xf32, #tpu.memory_space<vmem>>, vector<4x1xf32>
    %8 = vector.broadcast %7 : vector<4x1xf32> to vector<4x256xf32>
    %9 = arith.addf %6, %8 : vector<4x256xf32>
    %cst_8 = arith.constant 3.000000e+00 : f32
    %10 = vector.broadcast %cst_8 : f32 to vector<4x256xf32>
    %11 = arith.addf %9, %10 : vector<4x256xf32>
    %cst_9 = arith.constant 0.000000e+00 : f32
    %cst_10 = arith.constant 6.000000e+00 : f32
    %12 = vector.broadcast %cst_9 : f32 to vector<4x256xf32>
    %13 = arith.maximumf %12, %11 : vector<4x256xf32>
    %14 = vector.broadcast %cst_10 : f32 to vector<4x256xf32>
    %15 = arith.minimumf %14, %13 : vector<4x256xf32>
    %16 = arith.mulf %9, %15 : vector<4x256xf32>
    %cst_11 = arith.constant 0.166666672 : f32
    %17 = vector.broadcast %cst_11 : f32 to vector<4x256xf32>
    %18 = arith.mulf %16, %17 : vector<4x256xf32>
    %c0_12 = arith.constant 0 : index
    %c0_13 = arith.constant 0 : index
    %19 = vector.load %arg6[%c0_12, %c0_13] : memref<4x25xf32, #tpu.memory_space<vmem>>, vector<4x25xf32>
    %cst_14 = arith.constant 0.000000e+00 : f32
    %20 = vector.broadcast %cst_14 : f32 to vector<4x256xf32>
    %21 = vector.extract_strided_slice %18 {offsets = [0, 222], sizes = [4, 34], strides = [1, 1]} : vector<4x256xf32> to vector<4x34xf32>
    %22 = vector.extract_strided_slice %18 {offsets = [0, 0], sizes = [4, 222], strides = [1, 1]} : vector<4x256xf32> to vector<4x222xf32>
    %23 = tpu.concatenate %21, %22 in 1 : vector<4x34xf32>, vector<4x222xf32> -> vector<4x256xf32>
    %c0_15 = arith.constant 0 : index
    %c0_16 = arith.constant 0 : index
    %24 = vector.load %arg9[%c0_15, %c0_16] : memref<25x256xf32, #tpu.memory_space<vmem>>, vector<1x256xf32>
    %25 = vector.broadcast %24 : vector<1x256xf32> to vector<4x256xf32>
    %26 = arith.mulf %23, %25 : vector<4x256xf32>
    %27 = vector.extract_strided_slice %19 {offsets = [0, 0], sizes = [4, 1], strides = [1, 1]} : vector<4x25xf32> to vector<4x1xf32>
    %28 = vector.broadcast %27 : vector<4x1xf32> to vector<4x256xf32>
    %29 = arith.mulf %26, %28 : vector<4x256xf32>
    %30 = arith.addf %20, %29 : vector<4x256xf32>
    %31 = vector.extract_strided_slice %18 {offsets = [0, 223], sizes = [4, 33], strides = [1, 1]} : vector<4x256xf32> to vector<4x33xf32>
    %32 = vector.extract_strided_slice %18 {offsets = [0, 0], sizes = [4, 223], strides = [1, 1]} : vector<4x256xf32> to vector<4x223xf32>
    %33 = tpu.concatenate %31, %32 in 1 : vector<4x33xf32>, vector<4x223xf32> -> vector<4x256xf32>
    %c1 = arith.constant 1 : index
    %c0_17 = arith.constant 0 : index
    %34 = vector.load %arg9[%c1, %c0_17] : memref<25x256xf32, #tpu.memory_space<vmem>>, vector<1x256xf32>
    %35 = vector.broadcast %34 : vector<1x256xf32> to vector<4x256xf32>
    %36 = arith.mulf %33, %35 : vector<4x256xf32>
    %37 = vector.extract_strided_slice %19 {offsets = [0, 1], sizes = [4, 1], strides = [1, 1]} : vector<4x25xf32> to vector<4x1xf32>
    %38 = vector.broadcast %37 : vector<4x1xf32> to vector<4x256xf32>
    %39 = arith.mulf %36, %38 : vector<4x256xf32>
    %40 = arith.addf %30, %39 : vector<4x256xf32>
    %41 = vector.extract_strided_slice %18 {offsets = [0, 224], sizes = [4, 32], strides = [1, 1]} : vector<4x256xf32> to vector<4x32xf32>
    %42 = vector.extract_strided_slice %18 {offsets = [0, 0], sizes = [4, 224], strides = [1, 1]} : vector<4x256xf32> to vector<4x224xf32>
    %43 = tpu.concatenate %41, %42 in 1 : vector<4x32xf32>, vector<4x224xf32> -> vector<4x256xf32>
    %c2 = arith.constant 2 : index
    %c0_18 = arith.constant 0 : index
    %44 = vector.load %arg9[%c2, %c0_18] : memref<25x256xf32, #tpu.memory_space<vmem>>, vector<1x256xf32>
    %45 = vector.broadcast %44 : vector<1x256xf32> to vector<4x256xf32>
    %46 = arith.mulf %43, %45 : vector<4x256xf32>
    %47 = vector.extract_strided_slice %19 {offsets = [0, 2], sizes = [4, 1], strides = [1, 1]} : vector<4x25xf32> to vector<4x1xf32>
    %48 = vector.broadcast %47 : vector<4x1xf32> to vector<4x256xf32>
    %49 = arith.mulf %46, %48 : vector<4x256xf32>
    %50 = arith.addf %40, %49 : vector<4x256xf32>
    %51 = vector.extract_strided_slice %18 {offsets = [0, 225], sizes = [4, 31], strides = [1, 1]} : vector<4x256xf32> to vector<4x31xf32>
    %52 = vector.extract_strided_slice %18 {offsets = [0, 0], sizes = [4, 225], strides = [1, 1]} : vector<4x256xf32> to vector<4x225xf32>
    %53 = tpu.concatenate %51, %52 in 1 : vector<4x31xf32>, vector<4x225xf32> -> vector<4x256xf32>
    %c3 = arith.constant 3 : index
    %c0_19 = arith.constant 0 : index
    %54 = vector.load %arg9[%c3, %c0_19] : memref<25x256xf32, #tpu.memory_space<vmem>>, vector<1x256xf32>
    %55 = vector.broadcast %54 : vector<1x256xf32> to vector<4x256xf32>
    %56 = arith.mulf %53, %55 : vector<4x256xf32>
    %57 = vector.extract_strided_slice %19 {offsets = [0, 3], sizes = [4, 1], strides = [1, 1]} : vector<4x25xf32> to vector<4x1xf32>
    %58 = vector.broadcast %57 : vector<4x1xf32> to vector<4x256xf32>
    %59 = arith.mulf %56, %58 : vector<4x256xf32>
    %60 = arith.addf %50, %59 : vector<4x256xf32>
    %61 = vector.extract_strided_slice %18 {offsets = [0, 226], sizes = [4, 30], strides = [1, 1]} : vector<4x256xf32> to vector<4x30xf32>
    %62 = vector.extract_strided_slice %18 {offsets = [0, 0], sizes = [4, 226], strides = [1, 1]} : vector<4x256xf32> to vector<4x226xf32>
    %63 = tpu.concatenate %61, %62 in 1 : vector<4x30xf32>, vector<4x226xf32> -> vector<4x256xf32>
    %c4 = arith.constant 4 : index
    %c0_20 = arith.constant 0 : index
    %64 = vector.load %arg9[%c4, %c0_20] : memref<25x256xf32, #tpu.memory_space<vmem>>, vector<1x256xf32>
    %65 = vector.broadcast %64 : vector<1x256xf32> to vector<4x256xf32>
    %66 = arith.mulf %63, %65 : vector<4x256xf32>
    %67 = vector.extract_strided_slice %19 {offsets = [0, 4], sizes = [4, 1], strides = [1, 1]} : vector<4x25xf32> to vector<4x1xf32>
    %68 = vector.broadcast %67 : vector<4x1xf32> to vector<4x256xf32>
    %69 = arith.mulf %66, %68 : vector<4x256xf32>
    %70 = arith.addf %60, %69 : vector<4x256xf32>
    %71 = vector.extract_strided_slice %18 {offsets = [0, 238], sizes = [4, 18], strides = [1, 1]} : vector<4x256xf32> to vector<4x18xf32>
    %72 = vector.extract_strided_slice %18 {offsets = [0, 0], sizes = [4, 238], strides = [1, 1]} : vector<4x256xf32> to vector<4x238xf32>
    %73 = tpu.concatenate %71, %72 in 1 : vector<4x18xf32>, vector<4x238xf32> -> vector<4x256xf32>
    %c5 = arith.constant 5 : index
    %c0_21 = arith.constant 0 : index
    %74 = vector.load %arg9[%c5, %c0_21] : memref<25x256xf32, #tpu.memory_space<vmem>>, vector<1x256xf32>
    %75 = vector.broadcast %74 : vector<1x256xf32> to vector<4x256xf32>
    %76 = arith.mulf %73, %75 : vector<4x256xf32>
    %77 = vector.extract_strided_slice %19 {offsets = [0, 5], sizes = [4, 1], strides = [1, 1]} : vector<4x25xf32> to vector<4x1xf32>
    %78 = vector.broadcast %77 : vector<4x1xf32> to vector<4x256xf32>
    %79 = arith.mulf %76, %78 : vector<4x256xf32>
    %80 = arith.addf %70, %79 : vector<4x256xf32>
    %81 = vector.extract_strided_slice %18 {offsets = [0, 239], sizes = [4, 17], strides = [1, 1]} : vector<4x256xf32> to vector<4x17xf32>
    %82 = vector.extract_strided_slice %18 {offsets = [0, 0], sizes = [4, 239], strides = [1, 1]} : vector<4x256xf32> to vector<4x239xf32>
    %83 = tpu.concatenate %81, %82 in 1 : vector<4x17xf32>, vector<4x239xf32> -> vector<4x256xf32>
    %c6 = arith.constant 6 : index
    %c0_22 = arith.constant 0 : index
    %84 = vector.load %arg9[%c6, %c0_22] : memref<25x256xf32, #tpu.memory_space<vmem>>, vector<1x256xf32>
    %85 = vector.broadcast %84 : vector<1x256xf32> to vector<4x256xf32>
    %86 = arith.mulf %83, %85 : vector<4x256xf32>
    %87 = vector.extract_strided_slice %19 {offsets = [0, 6], sizes = [4, 1], strides = [1, 1]} : vector<4x25xf32> to vector<4x1xf32>
    %88 = vector.broadcast %87 : vector<4x1xf32> to vector<4x256xf32>
    %89 = arith.mulf %86, %88 : vector<4x256xf32>
    %90 = arith.addf %80, %89 : vector<4x256xf32>
    %91 = vector.extract_strided_slice %18 {offsets = [0, 240], sizes = [4, 16], strides = [1, 1]} : vector<4x256xf32> to vector<4x16xf32>
    %92 = vector.extract_strided_slice %18 {offsets = [0, 0], sizes = [4, 240], strides = [1, 1]} : vector<4x256xf32> to vector<4x240xf32>
    %93 = tpu.concatenate %91, %92 in 1 : vector<4x16xf32>, vector<4x240xf32> -> vector<4x256xf32>
    %c7 = arith.constant 7 : index
    %c0_23 = arith.constant 0 : index
    %94 = vector.load %arg9[%c7, %c0_23] : memref<25x256xf32, #tpu.memory_space<vmem>>, vector<1x256xf32>
    %95 = vector.broadcast %94 : vector<1x256xf32> to vector<4x256xf32>
    %96 = arith.mulf %93, %95 : vector<4x256xf32>
    %97 = vector.extract_strided_slice %19 {offsets = [0, 7], sizes = [4, 1], strides = [1, 1]} : vector<4x25xf32> to vector<4x1xf32>
    %98 = vector.broadcast %97 : vector<4x1xf32> to vector<4x256xf32>
    %99 = arith.mulf %96, %98 : vector<4x256xf32>
    %100 = arith.addf %90, %99 : vector<4x256xf32>
    %101 = vector.extract_strided_slice %18 {offsets = [0, 241], sizes = [4, 15], strides = [1, 1]} : vector<4x256xf32> to vector<4x15xf32>
    %102 = vector.extract_strided_slice %18 {offsets = [0, 0], sizes = [4, 241], strides = [1, 1]} : vector<4x256xf32> to vector<4x241xf32>
    %103 = tpu.concatenate %101, %102 in 1 : vector<4x15xf32>, vector<4x241xf32> -> vector<4x256xf32>
    %c8 = arith.constant 8 : index
    %c0_24 = arith.constant 0 : index
    %104 = vector.load %arg9[%c8, %c0_24] : memref<25x256xf32, #tpu.memory_space<vmem>>, vector<1x256xf32>
    %105 = vector.broadcast %104 : vector<1x256xf32> to vector<4x256xf32>
    %106 = arith.mulf %103, %105 : vector<4x256xf32>
    %107 = vector.extract_strided_slice %19 {offsets = [0, 8], sizes = [4, 1], strides = [1, 1]} : vector<4x25xf32> to vector<4x1xf32>
    %108 = vector.broadcast %107 : vector<4x1xf32> to vector<4x256xf32>
    %109 = arith.mulf %106, %108 : vector<4x256xf32>
    %110 = arith.addf %100, %109 : vector<4x256xf32>
    %111 = vector.extract_strided_slice %18 {offsets = [0, 242], sizes = [4, 14], strides = [1, 1]} : vector<4x256xf32> to vector<4x14xf32>
    %112 = vector.extract_strided_slice %18 {offsets = [0, 0], sizes = [4, 242], strides = [1, 1]} : vector<4x256xf32> to vector<4x242xf32>
    %113 = tpu.concatenate %111, %112 in 1 : vector<4x14xf32>, vector<4x242xf32> -> vector<4x256xf32>
    %c9 = arith.constant 9 : index
    %c0_25 = arith.constant 0 : index
    %114 = vector.load %arg9[%c9, %c0_25] : memref<25x256xf32, #tpu.memory_space<vmem>>, vector<1x256xf32>
    %115 = vector.broadcast %114 : vector<1x256xf32> to vector<4x256xf32>
    %116 = arith.mulf %113, %115 : vector<4x256xf32>
    %117 = vector.extract_strided_slice %19 {offsets = [0, 9], sizes = [4, 1], strides = [1, 1]} : vector<4x25xf32> to vector<4x1xf32>
    %118 = vector.broadcast %117 : vector<4x1xf32> to vector<4x256xf32>
    %119 = arith.mulf %116, %118 : vector<4x256xf32>
    %120 = arith.addf %110, %119 : vector<4x256xf32>
    %121 = vector.extract_strided_slice %18 {offsets = [0, 254], sizes = [4, 2], strides = [1, 1]} : vector<4x256xf32> to vector<4x2xf32>
    %122 = vector.extract_strided_slice %18 {offsets = [0, 0], sizes = [4, 254], strides = [1, 1]} : vector<4x256xf32> to vector<4x254xf32>
    %123 = tpu.concatenate %121, %122 in 1 : vector<4x2xf32>, vector<4x254xf32> -> vector<4x256xf32>
    %c10 = arith.constant 10 : index
    %c0_26 = arith.constant 0 : index
    %124 = vector.load %arg9[%c10, %c0_26] : memref<25x256xf32, #tpu.memory_space<vmem>>, vector<1x256xf32>
    %125 = vector.broadcast %124 : vector<1x256xf32> to vector<4x256xf32>
    %126 = arith.mulf %123, %125 : vector<4x256xf32>
    %127 = vector.extract_strided_slice %19 {offsets = [0, 10], sizes = [4, 1], strides = [1, 1]} : vector<4x25xf32> to vector<4x1xf32>
    %128 = vector.broadcast %127 : vector<4x1xf32> to vector<4x256xf32>
    %129 = arith.mulf %126, %128 : vector<4x256xf32>
    %130 = arith.addf %120, %129 : vector<4x256xf32>
    %131 = vector.extract_strided_slice %18 {offsets = [0, 255], sizes = [4, 1], strides = [1, 1]} : vector<4x256xf32> to vector<4x1xf32>
    %132 = vector.extract_strided_slice %18 {offsets = [0, 0], sizes = [4, 255], strides = [1, 1]} : vector<4x256xf32> to vector<4x255xf32>
    %133 = tpu.concatenate %131, %132 in 1 : vector<4x1xf32>, vector<4x255xf32> -> vector<4x256xf32>
    %c11 = arith.constant 11 : index
    %c0_27 = arith.constant 0 : index
    %134 = vector.load %arg9[%c11, %c0_27] : memref<25x256xf32, #tpu.memory_space<vmem>>, vector<1x256xf32>
    %135 = vector.broadcast %134 : vector<1x256xf32> to vector<4x256xf32>
    %136 = arith.mulf %133, %135 : vector<4x256xf32>
    %137 = vector.extract_strided_slice %19 {offsets = [0, 11], sizes = [4, 1], strides = [1, 1]} : vector<4x25xf32> to vector<4x1xf32>
    %138 = vector.broadcast %137 : vector<4x1xf32> to vector<4x256xf32>
    %139 = arith.mulf %136, %138 : vector<4x256xf32>
    %140 = arith.addf %130, %139 : vector<4x256xf32>
    %c12 = arith.constant 12 : index
    %c0_28 = arith.constant 0 : index
    %141 = vector.load %arg9[%c12, %c0_28] : memref<25x256xf32, #tpu.memory_space<vmem>>, vector<1x256xf32>
    %142 = vector.broadcast %141 : vector<1x256xf32> to vector<4x256xf32>
    %143 = arith.mulf %18, %142 : vector<4x256xf32>
    %144 = vector.extract_strided_slice %19 {offsets = [0, 12], sizes = [4, 1], strides = [1, 1]} : vector<4x25xf32> to vector<4x1xf32>
    %145 = vector.broadcast %144 : vector<4x1xf32> to vector<4x256xf32>
    %146 = arith.mulf %143, %145 : vector<4x256xf32>
    %147 = arith.addf %140, %146 : vector<4x256xf32>
    %148 = vector.extract_strided_slice %18 {offsets = [0, 1], sizes = [4, 255], strides = [1, 1]} : vector<4x256xf32> to vector<4x255xf32>
    %149 = vector.extract_strided_slice %18 {offsets = [0, 0], sizes = [4, 1], strides = [1, 1]} : vector<4x256xf32> to vector<4x1xf32>
    %150 = tpu.concatenate %148, %149 in 1 : vector<4x255xf32>, vector<4x1xf32> -> vector<4x256xf32>
    %c13 = arith.constant 13 : index
    %c0_29 = arith.constant 0 : index
    %151 = vector.load %arg9[%c13, %c0_29] : memref<25x256xf32, #tpu.memory_space<vmem>>, vector<1x256xf32>
    %152 = vector.broadcast %151 : vector<1x256xf32> to vector<4x256xf32>
    %153 = arith.mulf %150, %152 : vector<4x256xf32>
    %154 = vector.extract_strided_slice %19 {offsets = [0, 13], sizes = [4, 1], strides = [1, 1]} : vector<4x25xf32> to vector<4x1xf32>
    %155 = vector.broadcast %154 : vector<4x1xf32> to vector<4x256xf32>
    %156 = arith.mulf %153, %155 : vector<4x256xf32>
    %157 = arith.addf %147, %156 : vector<4x256xf32>
    %158 = vector.extract_strided_slice %18 {offsets = [0, 2], sizes = [4, 254], strides = [1, 1]} : vector<4x256xf32> to vector<4x254xf32>
    %159 = vector.extract_strided_slice %18 {offsets = [0, 0], sizes = [4, 2], strides = [1, 1]} : vector<4x256xf32> to vector<4x2xf32>
    %160 = tpu.concatenate %158, %159 in 1 : vector<4x254xf32>, vector<4x2xf32> -> vector<4x256xf32>
    %c14 = arith.constant 14 : index
    %c0_30 = arith.constant 0 : index
    %161 = vector.load %arg9[%c14, %c0_30] : memref<25x256xf32, #tpu.memory_space<vmem>>, vector<1x256xf32>
    %162 = vector.broadcast %161 : vector<1x256xf32> to vector<4x256xf32>
    %163 = arith.mulf %160, %162 : vector<4x256xf32>
    %164 = vector.extract_strided_slice %19 {offsets = [0, 14], sizes = [4, 1], strides = [1, 1]} : vector<4x25xf32> to vector<4x1xf32>
    %165 = vector.broadcast %164 : vector<4x1xf32> to vector<4x256xf32>
    %166 = arith.mulf %163, %165 : vector<4x256xf32>
    %167 = arith.addf %157, %166 : vector<4x256xf32>
    %168 = vector.extract_strided_slice %18 {offsets = [0, 14], sizes = [4, 242], strides = [1, 1]} : vector<4x256xf32> to vector<4x242xf32>
    %169 = vector.extract_strided_slice %18 {offsets = [0, 0], sizes = [4, 14], strides = [1, 1]} : vector<4x256xf32> to vector<4x14xf32>
    %170 = tpu.concatenate %168, %169 in 1 : vector<4x242xf32>, vector<4x14xf32> -> vector<4x256xf32>
    %c15 = arith.constant 15 : index
    %c0_31 = arith.constant 0 : index
    %171 = vector.load %arg9[%c15, %c0_31] : memref<25x256xf32, #tpu.memory_space<vmem>>, vector<1x256xf32>
    %172 = vector.broadcast %171 : vector<1x256xf32> to vector<4x256xf32>
    %173 = arith.mulf %170, %172 : vector<4x256xf32>
    %174 = vector.extract_strided_slice %19 {offsets = [0, 15], sizes = [4, 1], strides = [1, 1]} : vector<4x25xf32> to vector<4x1xf32>
    %175 = vector.broadcast %174 : vector<4x1xf32> to vector<4x256xf32>
    %176 = arith.mulf %173, %175 : vector<4x256xf32>
    %177 = arith.addf %167, %176 : vector<4x256xf32>
    %178 = vector.extract_strided_slice %18 {offsets = [0, 15], sizes = [4, 241], strides = [1, 1]} : vector<4x256xf32> to vector<4x241xf32>
    %179 = vector.extract_strided_slice %18 {offsets = [0, 0], sizes = [4, 15], strides = [1, 1]} : vector<4x256xf32> to vector<4x15xf32>
    %180 = tpu.concatenate %178, %179 in 1 : vector<4x241xf32>, vector<4x15xf32> -> vector<4x256xf32>
    %c16 = arith.constant 16 : index
    %c0_32 = arith.constant 0 : index
    %181 = vector.load %arg9[%c16, %c0_32] : memref<25x256xf32, #tpu.memory_space<vmem>>, vector<1x256xf32>
    %182 = vector.broadcast %181 : vector<1x256xf32> to vector<4x256xf32>
    %183 = arith.mulf %180, %182 : vector<4x256xf32>
    %184 = vector.extract_strided_slice %19 {offsets = [0, 16], sizes = [4, 1], strides = [1, 1]} : vector<4x25xf32> to vector<4x1xf32>
    %185 = vector.broadcast %184 : vector<4x1xf32> to vector<4x256xf32>
    %186 = arith.mulf %183, %185 : vector<4x256xf32>
    %187 = arith.addf %177, %186 : vector<4x256xf32>
    %188 = vector.extract_strided_slice %18 {offsets = [0, 16], sizes = [4, 240], strides = [1, 1]} : vector<4x256xf32> to vector<4x240xf32>
    %189 = vector.extract_strided_slice %18 {offsets = [0, 0], sizes = [4, 16], strides = [1, 1]} : vector<4x256xf32> to vector<4x16xf32>
    %190 = tpu.concatenate %188, %189 in 1 : vector<4x240xf32>, vector<4x16xf32> -> vector<4x256xf32>
    %c17 = arith.constant 17 : index
    %c0_33 = arith.constant 0 : index
    %191 = vector.load %arg9[%c17, %c0_33] : memref<25x256xf32, #tpu.memory_space<vmem>>, vector<1x256xf32>
    %192 = vector.broadcast %191 : vector<1x256xf32> to vector<4x256xf32>
    %193 = arith.mulf %190, %192 : vector<4x256xf32>
    %194 = vector.extract_strided_slice %19 {offsets = [0, 17], sizes = [4, 1], strides = [1, 1]} : vector<4x25xf32> to vector<4x1xf32>
    %195 = vector.broadcast %194 : vector<4x1xf32> to vector<4x256xf32>
    %196 = arith.mulf %193, %195 : vector<4x256xf32>
    %197 = arith.addf %187, %196 : vector<4x256xf32>
    %198 = vector.extract_strided_slice %18 {offsets = [0, 17], sizes = [4, 239], strides = [1, 1]} : vector<4x256xf32> to vector<4x239xf32>
    %199 = vector.extract_strided_slice %18 {offsets = [0, 0], sizes = [4, 17], strides = [1, 1]} : vector<4x256xf32> to vector<4x17xf32>
    %200 = tpu.concatenate %198, %199 in 1 : vector<4x239xf32>, vector<4x17xf32> -> vector<4x256xf32>
    %c18 = arith.constant 18 : index
    %c0_34 = arith.constant 0 : index
    %201 = vector.load %arg9[%c18, %c0_34] : memref<25x256xf32, #tpu.memory_space<vmem>>, vector<1x256xf32>
    %202 = vector.broadcast %201 : vector<1x256xf32> to vector<4x256xf32>
    %203 = arith.mulf %200, %202 : vector<4x256xf32>
    %204 = vector.extract_strided_slice %19 {offsets = [0, 18], sizes = [4, 1], strides = [1, 1]} : vector<4x25xf32> to vector<4x1xf32>
    %205 = vector.broadcast %204 : vector<4x1xf32> to vector<4x256xf32>
    %206 = arith.mulf %203, %205 : vector<4x256xf32>
    %207 = arith.addf %197, %206 : vector<4x256xf32>
    %208 = vector.extract_strided_slice %18 {offsets = [0, 18], sizes = [4, 238], strides = [1, 1]} : vector<4x256xf32> to vector<4x238xf32>
    %209 = vector.extract_strided_slice %18 {offsets = [0, 0], sizes = [4, 18], strides = [1, 1]} : vector<4x256xf32> to vector<4x18xf32>
    %210 = tpu.concatenate %208, %209 in 1 : vector<4x238xf32>, vector<4x18xf32> -> vector<4x256xf32>
    %c19 = arith.constant 19 : index
    %c0_35 = arith.constant 0 : index
    %211 = vector.load %arg9[%c19, %c0_35] : memref<25x256xf32, #tpu.memory_space<vmem>>, vector<1x256xf32>
    %212 = vector.broadcast %211 : vector<1x256xf32> to vector<4x256xf32>
    %213 = arith.mulf %210, %212 : vector<4x256xf32>
    %214 = vector.extract_strided_slice %19 {offsets = [0, 19], sizes = [4, 1], strides = [1, 1]} : vector<4x25xf32> to vector<4x1xf32>
    %215 = vector.broadcast %214 : vector<4x1xf32> to vector<4x256xf32>
    %216 = arith.mulf %213, %215 : vector<4x256xf32>
    %217 = arith.addf %207, %216 : vector<4x256xf32>
    %218 = vector.extract_strided_slice %18 {offsets = [0, 30], sizes = [4, 226], strides = [1, 1]} : vector<4x256xf32> to vector<4x226xf32>
    %219 = vector.extract_strided_slice %18 {offsets = [0, 0], sizes = [4, 30], strides = [1, 1]} : vector<4x256xf32> to vector<4x30xf32>
    %220 = tpu.concatenate %218, %219 in 1 : vector<4x226xf32>, vector<4x30xf32> -> vector<4x256xf32>
    %c20 = arith.constant 20 : index
    %c0_36 = arith.constant 0 : index
    %221 = vector.load %arg9[%c20, %c0_36] : memref<25x256xf32, #tpu.memory_space<vmem>>, vector<1x256xf32>
    %222 = vector.broadcast %221 : vector<1x256xf32> to vector<4x256xf32>
    %223 = arith.mulf %220, %222 : vector<4x256xf32>
    %224 = vector.extract_strided_slice %19 {offsets = [0, 20], sizes = [4, 1], strides = [1, 1]} : vector<4x25xf32> to vector<4x1xf32>
    %225 = vector.broadcast %224 : vector<4x1xf32> to vector<4x256xf32>
    %226 = arith.mulf %223, %225 : vector<4x256xf32>
    %227 = arith.addf %217, %226 : vector<4x256xf32>
    %228 = vector.extract_strided_slice %18 {offsets = [0, 31], sizes = [4, 225], strides = [1, 1]} : vector<4x256xf32> to vector<4x225xf32>
    %229 = vector.extract_strided_slice %18 {offsets = [0, 0], sizes = [4, 31], strides = [1, 1]} : vector<4x256xf32> to vector<4x31xf32>
    %230 = tpu.concatenate %228, %229 in 1 : vector<4x225xf32>, vector<4x31xf32> -> vector<4x256xf32>
    %c21 = arith.constant 21 : index
    %c0_37 = arith.constant 0 : index
    %231 = vector.load %arg9[%c21, %c0_37] : memref<25x256xf32, #tpu.memory_space<vmem>>, vector<1x256xf32>
    %232 = vector.broadcast %231 : vector<1x256xf32> to vector<4x256xf32>
    %233 = arith.mulf %230, %232 : vector<4x256xf32>
    %234 = vector.extract_strided_slice %19 {offsets = [0, 21], sizes = [4, 1], strides = [1, 1]} : vector<4x25xf32> to vector<4x1xf32>
    %235 = vector.broadcast %234 : vector<4x1xf32> to vector<4x256xf32>
    %236 = arith.mulf %233, %235 : vector<4x256xf32>
    %237 = arith.addf %227, %236 : vector<4x256xf32>
    %238 = vector.extract_strided_slice %18 {offsets = [0, 32], sizes = [4, 224], strides = [1, 1]} : vector<4x256xf32> to vector<4x224xf32>
    %239 = vector.extract_strided_slice %18 {offsets = [0, 0], sizes = [4, 32], strides = [1, 1]} : vector<4x256xf32> to vector<4x32xf32>
    %240 = tpu.concatenate %238, %239 in 1 : vector<4x224xf32>, vector<4x32xf32> -> vector<4x256xf32>
    %c22 = arith.constant 22 : index
    %c0_38 = arith.constant 0 : index
    %241 = vector.load %arg9[%c22, %c0_38] : memref<25x256xf32, #tpu.memory_space<vmem>>, vector<1x256xf32>
    %242 = vector.broadcast %241 : vector<1x256xf32> to vector<4x256xf32>
    %243 = arith.mulf %240, %242 : vector<4x256xf32>
    %244 = vector.extract_strided_slice %19 {offsets = [0, 22], sizes = [4, 1], strides = [1, 1]} : vector<4x25xf32> to vector<4x1xf32>
    %245 = vector.broadcast %244 : vector<4x1xf32> to vector<4x256xf32>
    %246 = arith.mulf %243, %245 : vector<4x256xf32>
    %247 = arith.addf %237, %246 : vector<4x256xf32>
    %248 = vector.extract_strided_slice %18 {offsets = [0, 33], sizes = [4, 223], strides = [1, 1]} : vector<4x256xf32> to vector<4x223xf32>
    %249 = vector.extract_strided_slice %18 {offsets = [0, 0], sizes = [4, 33], strides = [1, 1]} : vector<4x256xf32> to vector<4x33xf32>
    %250 = tpu.concatenate %248, %249 in 1 : vector<4x223xf32>, vector<4x33xf32> -> vector<4x256xf32>
    %c23 = arith.constant 23 : index
    %c0_39 = arith.constant 0 : index
    %251 = vector.load %arg9[%c23, %c0_39] : memref<25x256xf32, #tpu.memory_space<vmem>>, vector<1x256xf32>
    %252 = vector.broadcast %251 : vector<1x256xf32> to vector<4x256xf32>
    %253 = arith.mulf %250, %252 : vector<4x256xf32>
    %254 = vector.extract_strided_slice %19 {offsets = [0, 23], sizes = [4, 1], strides = [1, 1]} : vector<4x25xf32> to vector<4x1xf32>
    %255 = vector.broadcast %254 : vector<4x1xf32> to vector<4x256xf32>
    %256 = arith.mulf %253, %255 : vector<4x256xf32>
    %257 = arith.addf %247, %256 : vector<4x256xf32>
    %258 = vector.extract_strided_slice %18 {offsets = [0, 34], sizes = [4, 222], strides = [1, 1]} : vector<4x256xf32> to vector<4x222xf32>
    %259 = vector.extract_strided_slice %18 {offsets = [0, 0], sizes = [4, 34], strides = [1, 1]} : vector<4x256xf32> to vector<4x34xf32>
    %260 = tpu.concatenate %258, %259 in 1 : vector<4x222xf32>, vector<4x34xf32> -> vector<4x256xf32>
    %c24 = arith.constant 24 : index
    %c0_40 = arith.constant 0 : index
    %261 = vector.load %arg9[%c24, %c0_40] : memref<25x256xf32, #tpu.memory_space<vmem>>, vector<1x256xf32>
    %262 = vector.broadcast %261 : vector<1x256xf32> to vector<4x256xf32>
    %263 = arith.mulf %260, %262 : vector<4x256xf32>
    %264 = vector.extract_strided_slice %19 {offsets = [0, 24], sizes = [4, 1], strides = [1, 1]} : vector<4x25xf32> to vector<4x1xf32>
    %265 = vector.broadcast %264 : vector<4x1xf32> to vector<4x256xf32>
    %266 = arith.mulf %263, %265 : vector<4x256xf32>
    %267 = arith.addf %257, %266 : vector<4x256xf32>
    %c0_41 = arith.constant 0 : index
    %c0_42 = arith.constant 0 : index
    %268 = vector.load %arg7[%c0_41, %c0_42] : memref<4x1xf32, #tpu.memory_space<vmem>>, vector<4x1xf32>
    %269 = vector.broadcast %268 : vector<4x1xf32> to vector<4x256xf32>
    %270 = arith.mulf %267, %269 : vector<4x256xf32>
    %c0_43 = arith.constant 0 : index
    %c0_44 = arith.constant 0 : index
    %271 = vector.load %arg8[%c0_43, %c0_44] : memref<4x1xf32, #tpu.memory_space<vmem>>, vector<4x1xf32>
    %272 = vector.broadcast %271 : vector<4x1xf32> to vector<4x256xf32>
    %273 = arith.addf %270, %272 : vector<4x256xf32>
    %cst_45 = arith.constant 3.000000e+00 : f32
    %274 = vector.broadcast %cst_45 : f32 to vector<4x256xf32>
    %275 = arith.addf %273, %274 : vector<4x256xf32>
    %cst_46 = arith.constant 0.000000e+00 : f32
    %cst_47 = arith.constant 6.000000e+00 : f32
    %276 = vector.broadcast %cst_46 : f32 to vector<4x256xf32>
    %277 = arith.maximumf %276, %275 : vector<4x256xf32>
    %278 = vector.broadcast %cst_47 : f32 to vector<4x256xf32>
    %279 = arith.minimumf %278, %277 : vector<4x256xf32>
    %280 = arith.mulf %273, %279 : vector<4x256xf32>
    %cst_48 = arith.constant 0.166666672 : f32
    %281 = vector.broadcast %cst_48 : f32 to vector<4x256xf32>
    %282 = arith.mulf %280, %281 : vector<4x256xf32>
    %c0_49 = arith.constant 0 : index
    %c0_50 = arith.constant 0 : index
    %c0_51 = arith.constant 0 : index
    %c0_52 = arith.constant 0 : index
    %283 = vector.load %arg10[%c0_49, %c0_50, %c0_51, %c0_52] : memref<1x2x4x256xf32, #tpu.memory_space<vmem>>, vector<1x1x4x256xf32>
    %284 = vector.shape_cast %283 : vector<1x1x4x256xf32> to vector<4x256xf32>
    %285 = vector.shape_cast %18 : vector<4x256xf32> to vector<1x1x4x256xf32>
    tpu.vector_store %arg10[%c0_49, %c0_50, %c0_51, %c0_52], %285 {strides = array<i32>} : memref<1x2x4x256xf32, #tpu.memory_space<vmem>>, vector<1x1x4x256xf32>,
    %c0_53 = arith.constant 0 : index
    %c1_54 = arith.constant 1 : index
    %c0_55 = arith.constant 0 : index
    %c0_56 = arith.constant 0 : index
    %286 = vector.load %arg10[%c0_53, %c1_54, %c0_55, %c0_56] : memref<1x2x4x256xf32, #tpu.memory_space<vmem>>, vector<1x1x4x256xf32>
    %287 = vector.shape_cast %286 : vector<1x1x4x256xf32> to vector<4x256xf32>
    %288 = vector.shape_cast %282 : vector<4x256xf32> to vector<1x1x4x256xf32>
    tpu.vector_store %arg10[%c0_53, %c1_54, %c0_55, %c0_56], %288 {strides = array<i32>} : memref<1x2x4x256xf32, #tpu.memory_space<vmem>>, vector<1x1x4x256xf32>,
    return
  }
  func.func @transform_0(%arg0: i32, %arg1: i32) -> (i32, i32, i32) {
    %c0_i32 = arith.constant 0 : i32
    %c0_i32_0 = arith.constant 0 : i32
    %c0_i32_1 = arith.constant 0 : i32
    return %arg0, %c0_i32, %c0_i32_0 : i32, i32, i32
  }
  func.func @transform_1(%arg0: i32, %arg1: i32) -> (i32, i32) {
    %c0_i32 = arith.constant 0 : i32
    %c0_i32_0 = arith.constant 0 : i32
    return %arg1, %c0_i32 : i32, i32
  }
  func.func @transform_2(%arg0: i32, %arg1: i32) -> (i32, i32) {
    %c0_i32 = arith.constant 0 : i32
    %c0_i32_0 = arith.constant 0 : i32
    return %arg1, %c0_i32 : i32, i32
  }
  func.func @transform_3(%arg0: i32, %arg1: i32) -> (i32, i32) {
    %c0_i32 = arith.constant 0 : i32
    %c0_i32_0 = arith.constant 0 : i32
    return %arg1, %c0_i32 : i32, i32
  }
  func.func @transform_4(%arg0: i32, %arg1: i32) -> (i32, i32) {
    %c0_i32 = arith.constant 0 : i32
    %c0_i32_0 = arith.constant 0 : i32
    return %arg1, %c0_i32 : i32, i32
  }
  func.func @transform_5(%arg0: i32, %arg1: i32) -> (i32, i32) {
    %c0_i32 = arith.constant 0 : i32
    %c0_i32_0 = arith.constant 0 : i32
    return %arg1, %c0_i32 : i32, i32
  }
  func.func @transform_6(%arg0: i32, %arg1: i32) -> (i32, i32) {
    %c0_i32 = arith.constant 0 : i32
    %c0_i32_0 = arith.constant 0 : i32
    return %arg1, %c0_i32 : i32, i32
  }
  func.func @transform_7(%arg0: i32, %arg1: i32) -> (i32, i32) {
    %c0_i32 = arith.constant 0 : i32
    %c0_i32_0 = arith.constant 0 : i32
    %c0_i32_1 = arith.constant 0 : i32
    return %c0_i32, %c0_i32_0 : i32, i32
  }
  func.func @transform_8(%arg0: i32, %arg1: i32) -> (i32, i32, i32, i32) {
    %c0_i32 = arith.constant 0 : i32
    %c0_i32_0 = arith.constant 0 : i32
    %c0_i32_1 = arith.constant 0 : i32
    return %arg0, %c0_i32, %arg1, %c0_i32_0 : i32, i32, i32, i32
  }
}

</mosaic_0001>

<bundles_post_ra>
// kernel: tpu_custom_call.1
= control target key start
LH: loop header
LB: loop body
LE: loop exit
PB: predicated region body
PF: predicated region fallthrough
CT: control target
= control target key end

     0   :  { %13 = vsyncpa [#allocation3], 0  ;;  %s2573_s0 = inlined_call_operand.vmem [shape: f32[2,4,256], index: 0, kind: input, shape index: {}]   ;;  %s2574_s1 = inlined_call_operand.vmem [shape: f32[4,4], index: 1, kind: input, shape index: {}]   ;;  %s2575_s2 = inlined_call_operand.vmem [shape: f32[4,1], index: 2, kind: input, shape index: {}]   ;;  %s2576_s3 = inlined_call_operand.vmem [shape: f32[4,1], index: 3, kind: input, shape index: {}]   ;;  %s2577_s4 = inlined_call_operand.vmem [shape: f32[4,25], index: 4, kind: input, shape index: {}]   ;;  %s2578_s5 = inlined_call_operand.vmem [shape: f32[4,1], index: 5, kind: input, shape index: {}]   ;;  %s2579_s6 = inlined_call_operand.vmem [shape: f32[4,1], index: 6, kind: input, shape index: {}]   ;;  %s2580_s7 = inlined_call_operand.hbm [shape: f32[25,256], index: 7, kind: input, shape index: {}]   ;;  %s2581_s8 = inlined_call_operand.hbm [shape: f32[2,2,4,256], index: 8, kind: output, shape index: {}]  }
   0x1   :  { %14 = vsyncpa [#allocation4], 0 }
   0x2   :  { %16 = vsyncpa [#allocation4 + $0x1], 0  ;;  %s1977_s27 = smov 0   ;;  %s1979_s28 = smov 0  }
   0x3   :  { %s1981_s29 = smov 0   ;;  %s1983_s30 = smov 0  }
   0x4   :  { %s1985_s9 = smov 0   ;;  %s1987_s10 = smov 0  }
   0x5 LB: > { %s1589_s11 = sadd.s32 4294967295, %s1874_s10   ;;  %s1590_s12 = sadd.s32 4294967294, %s1874_s10   ;;  %s1874_s10 = sphi %s1987_s10, %s22_s10   ;;  %s1870_s9 = sphi %s1985_s9, %s2637_s9   ;;  %s1866_s30 = sphi %s1983_s30, %s2636_s30   ;;  %s1862_s29 = sphi %s1981_s29, %s2635_s29   ;;  %s1858_s28 = sphi %s1979_s28, %s2634_s28   ;;  %s1854_s27 = sphi %s1977_s27, %s2633_s27  }
   0x6   : > { %s34_s13 = sadd.s32 1, %s1870_s9  ;;  %s246_s14 = sadd.s32 1, %s1862_s29 }
   0x7   : > { %p36_p0 = scmp.ge.s32.totalorder %s34_s13, 2  ;;  %p256_p1 = scmp.ne.s32.totalorder %s1862_s29, %s1858_s28 }
   0x8   : > { %p257_p2 = scmp.eq.s32.totalorder %s1589_s11, 1  ;;  %p262_p3 = scmp.ne.s32.totalorder %s1858_s28, %s1854_s27 }
   0x9   : > { %s2639_s13 = smov (%p36_p0, %s34_s13), 0  ;;  %p263_p5 = scmp.eq.s32.totalorder %s1590_s12, 1 }
   0xa   : > { %p2017_p4 = por %p257_p2, %p256_p1  ;;  %s241_s16 = ssub.s32 %s1870_s9, %s2639_s13 }
   0xb   : > { %p1591_p6 = scmp.ge.s32.totalorder %s1874_s10, 1  ;;  %p244_p7 = scmp.eq.s32.totalorder %s241_s16, 0 }
   0xc   : > { %s2603_s15 = scalar_select %p2017_p4, 1, 0 }
   0xd   : > { %p2024_p8 = por %p263_p5, %p262_p3  ;;  %p270_p9 = scmp.lt.s32.totalorder %s1874_s10, 3 }
   0xe   : > { %s2030_s18 = scalar_select %p244_p7, %s1862_s29, %s246_s14  }
   0xf   : > { %s2604_s17 = scalar_select %p2024_p8, 1, 0 }
  0x10   : > { %p2032_p10 = pnand %p1591_p6, %p270_p9  ;;  %p2036_p11 = scmp.eq.s32.totalorder %s1589_s11, 0 }
  0x11   : > { %s1876_s21 = smov [#allocation2]   ;;  %s1764_s26 = scalar_lea.hbm %s2580_s7, 1024 }
  0x12   : > { %s2605_s19 = scalar_select %p2032_p10, 1, 0 }
  0x13   : > { %s2606_s20 = scalar_select %p2036_p11, 1, 0 }
  0x14   : > { %p1622_p12 = pneg %p2032_p10  ;;  %s324_s22 = sshll.u32 %s1876_s21, 4  ;;  %s325_s22 = int_to_ptr.vmem [resolvable:$true] %s324_s22 }
  0x15   : > { %p1765_p0 = scmp.ne.s32.totalorder %s2580_s7, %s1764_s26  ;;  %p1771_p5 = scmp.lt.u32.totalorder %s1764_s26, %s2580_s7 }
  0x16   : > { %p2044_p13 = pnand %p2036_p11, %p1622_p12 }
  0x18   : > { %p1766_p1 = pneg %p2044_p13 }
  0x1a   : > { %p1767_p2 = pnand %p1766_p1, %p1765_p0 }
  0x1c   : > { %p1768_p3 = pneg %p1767_p2 }
  0x1e   : > { %p1773_p6 = pnand %p1771_p5, %p1768_p3 }
  0x20   : > { %1776 = shalt.err (!%p1773_p6)
}
  0x21   : > { %s1777_s21 = scalar_lea.vmem %s325_s22, 1024  ;;  %p1785_p8 = scmp.lt.s32.totalorder %s325_s22, %s325_s22 }
  0x22   : > { %p1778_p7 = scmp.ne.s32.totalorder %s325_s22, %s1777_s21  ;;  %p1786_p4 = scmp.lt.s32.totalorder %s1777_s21, %s1777_s21 }
  0x24   : > { %p1780_p9 = pnand %p1778_p7, %p1766_p1  ;;  %p1787_p11 = por %p1786_p4, %p1785_p8 }
  0x26   : > { %p1781_p12 = pneg %p1780_p9 }
  0x28   : > { %p1788_p10 = pnand %p1787_p11, %p1781_p12 }
  0x2a   : > { %1791 = shalt.err (!%p1788_p10)
}
  0x2b   : > { %s1877_s24 = smov 256   ;;  %s1878_s25 = smov 16  }
  0x2c   : > { %1625 = dma.hbm_to_vmem [thread:$0]  (!%p2044_p13), %s2580_s7, 1024, %s325_s22, [#allocation3], %s1877_s24, %s1877_s24, %s1878_s25  }
  0x2d   : > { %p2608_p0 = scmp.ne.s32.totalorder %s2605_s19, 0 }
  0x2f   : > { %348 = sbr.rel (%p2608_p0) target bundleno = 631 (0x277), region = 52 }
  0x36   : > { %p2609_p2 = scmp.ne.s32.totalorder %s2606_s20, 0 }
  0x38   : > { %1845 = dma.done.wait (%p2609_p2), [#allocation3], 1024  }
  0x39   : > { %1847 = vsyncadd (%p2609_p2), [#allocation3], 4294966272  ;;  %p406_p4 = scmp.lt.s32.totalorder %s1866_s30, 1  ;;  %v1879_v0 = vmov 0.0   ;;  %v1880_v1 = vmov 0   ;;  %v1881_v2 = vmov 1  }
  0x3a   : > { %512 = vmatprep.mubr.f32.mxu0 %v1879_v0  ;;  %1736 = vset.pattern.permute.xlu0 %v1880_v1  ;;  %vm443_vm0 = vcmask 1043456   ;;  %v519_v4 = vld [vmem:[%s2575_s2] sm:$0xf]  ;;  %vm439_vm1 = vcmask 31744   ;;  %v1882_v9 = vmov 12   ;;  %v1883_v10 = vmov 13  }
  0x3b   : > { %s407_s26 = scalar_select %p406_p4, %s1866_s30, 1  ;;  %1737 = vset.pattern.permute.xlu1 %v1881_v2  ;;  %522 = vperm.xlu0 %1736, %v519_v4   ;;  %v2082_v6 = vld [vmem:[%s2577_s4] sm:$0xf]  ;;  %v1884_v11 = vmov 2   ;;  %v1885_v12 = vmov 3   ;;  %v1886_v13 = vmov 4  }
  0x3c   : > { %v436_v7 = vld [vmem:[%s2574_s1] sm:$0xf]  ;;  %607 = vperm.xlu1 %1737, %v2082_v6   ;;  %v1887_v14 = vmov 5   ;;  %v1888_v15 = vmov 6   ;;  %v1889_v16 = vmov 7   ;;  %v1890_v17 = vmov 8  }
  0x3d   : > { %s1614_s22 = sshll.u32 %s407_s26, 3  ;;  %v527_v8 = vld [vmem:[%s2576_s3] sm:$0xf]  ;;  %v1891_v18 = vmov 9   ;;  %v1892_v19 = vmov 10   ;;  %v1893_v20 = vmov 11  }
  0x3e   : > { %s410_s14 = scalar_lea.vmem %s2573_s0, %s1614_s22  ;;  %v1894_v21 = vmov 14   ;;  %v1895_v22 = vmov 15   ;;  %v1896_v23 = vmov 16   ;;  %v1897_v24 = vmov 17   ;;  %s2586_s22 = sand.u32 1, %s1858_s28  }
  0x3f   : > { %v435_v3 = vld [vmem:[%s410_s14] sm:$0xff]  ;;  %530 = vperm.xlu0 %1736, %v527_v8   ;;  %v1898_v25 = vmov 18   ;;  %v1899_v26 = vmov 19   ;;  %v1900_v27 = vmov 20   ;;  %s1602_s19 = sshll.u32 %s2586_s22, 4  ;;  %s1901_s23 = smov 33  }
  0x40   : > { %v438_v5 = vcombine.high %v435_v3, %v435_v3  ;;  %1748 = vset.pattern.permute.xlu1 %v1882_v9  ;;  %s1902_s14 = smov 34   ;;  %s2124_s20 = scalar_lea.vmem [#allocation5], %s1602_s19  ;;  %v1906_v47 = vmov 21   ;;  %v1908_v48 = vmov 22   ;;  %v1910_v49 = vmov 23  }
  0x41   : > { %960 = vperm.xlu1 %1748, %v2082_v6   ;;  %s1903_s16 = smov 32   ;;  %s1904_s21 = smov 31   ;;  %v1912_v50 = vmov 24   ;;  %v1363_v51 = vld [vmem:[%s2578_s5] sm:$0xf]  ;;  %vm586_vm2 = vcmask 269312  }
  0x42   : > { %1605 = vmatprep.subr.msk.mxu0 %vm443_vm0, %v438_v5  ;;  %s1905_s24 = smov 30   ;;  %s2592_s25 = smov 18   ;;  %vm553_vm3 = vcmask 277504   ;;  %vm619_vm4 = vcmask 261120   ;;  %vm652_vm5 = vcmask 252928   ;;  %vm685_vm6 = vcmask 244736  }
  0x43   : > { %1606 = vmatpush1.msk.msra.mxu0 %vm443_vm0, %v435_v3  ;;  %574 = vperm.xlu0 %1736, %v2082_v6   ;;  %s2589_s11 = smov 17   ;;  %s2587_s12 = smov 16   ;;  %vm718_vm7 = vcmask 146432   ;;  %vm751_vm8 = vcmask 138240   ;;  %vm784_vm9 = vcmask 130048   ;;  %vm817_vm10 = vcmask 121856  }
  0x44   : > { %1607 = vmatmul.mubr.msk.f32.vlgmr.msra.gmra.mrb[0].mxu0 %vm439_vm1, %v436_v7  ;;  %s2588_s26 = smov 15   ;;  %s2590_s19 = smov 14   ;;  %vm850_vm11 = vcmask 113664   ;;  %vm883_vm12 = vcmask 15360   ;;  %vm916_vm13 = vcmask 7168   ;;  %vm971_vm14 = vcmask 1039360  }
  0x45   : > { %1749 = vset.pattern.permute.xlu1 %v1883_v10  ;;  %s2593_s22 = smov 2   ;;  %vm1004_vm15 = vcmask 1031168   ;;  %vm1037_vm0 = vcmask 932864   ;;  %vm1070_vm1 = vcmask 924672   ;;  %p2631_p10 = scmp.ne.s32.totalorder %s2603_s15, 0 }
  0x46   : > { %993 = vperm.xlu1 %1749, %v2082_v6  }
  0x47   : > { %1738 = vset.pattern.permute.xlu0 %v1884_v11 }
  0x48   : > { %640 = vperm.xlu0 %1738, %v2082_v6  }
  0x4a   : > { %1762 = vset.pattern.permute.xlu1 %v1880_v1 }
  0x4c   : > { %1739 = vset.pattern.permute.xlu0 %v1885_v12 }
  0x4d   : > { %673 = vperm.xlu0 %1739, %v2082_v6  }
  0x51   : > { %1740 = vset.pattern.permute.xlu0 %v1886_v13 }
  0x52   : > { %706 = vperm.xlu0 %1740, %v2082_v6  }
  0x56   : > { %1741 = vset.pattern.permute.xlu0 %v1887_v14 }
  0x57   : > { %739 = vperm.xlu0 %1741, %v2082_v6  }
  0x5b   : > { %1742 = vset.pattern.permute.xlu0 %v1888_v15 }
  0x5c   : > { %772 = vperm.xlu0 %1742, %v2082_v6  }
  0x60   : > { %1743 = vset.pattern.permute.xlu0 %v1889_v16 }
  0x61   : > { %805 = vperm.xlu0 %1743, %v2082_v6  }
  0x65   : > { %1744 = vset.pattern.permute.xlu0 %v1890_v17 }
  0x66   : > { %838 = vperm.xlu0 %1744, %v2082_v6  }
  0x6a   : > { %1745 = vset.pattern.permute.xlu0 %v1891_v18 }
  0x6b   : > { %871 = vperm.xlu0 %1745, %v2082_v6  }
  0x6f   : > { %1746 = vset.pattern.permute.xlu0 %v1892_v19 }
  0x70   : > { %904 = vperm.xlu0 %1746, %v2082_v6  }
  0x74   : > { %1747 = vset.pattern.permute.xlu0 %v1893_v20 }
  0x75   : > { %937 = vperm.xlu0 %1747, %v2082_v6  }
  0x79   : > { %1750 = vset.pattern.permute.xlu0 %v1894_v21  ;;  %v1371_v21 = vld [vmem:[%s2579_s6] sm:$0xf] }
  0x7a   : > { %1026 = vperm.xlu0 %1750, %v2082_v6  }
  0x7e   : > { %1751 = vset.pattern.permute.xlu0 %v1895_v22 }
  0x7f   : > { %1059 = vperm.xlu0 %1751, %v2082_v6  }
  0x83   : > { %1752 = vset.pattern.permute.xlu0 %v1896_v23 }
  0x84   : > { %1092 = vperm.xlu0 %1752, %v2082_v6  }
  0x88   : > { %1753 = vset.pattern.permute.xlu0 %v1897_v24 }
  0x89   : > { %1125 = vperm.xlu0 %1753, %v2082_v6  }
  0x8d   : > { %1754 = vset.pattern.permute.xlu0 %v1898_v25 }
  0x8e   : > { %1158 = vperm.xlu0 %1754, %v2082_v6  }
  0x92   : > { %1755 = vset.pattern.permute.xlu0 %v1899_v26 }
  0x93   : > { %1191 = vperm.xlu0 %1755, %v2082_v6  }
  0x97   : > { %1756 = vset.pattern.permute.xlu0 %v1900_v27  ;;  %v560_v27 = vlaneseq }
  0xba   : > { %v523_v28 = vpop.permute.xlu0 %522 }
  0xbb   : > { %v2188_v53 = vpop.permute.xlu1 %607 }
  0xbe   : > { %v531_v32 = vpop.permute.xlu0 %530 }
  0xc0   : > { %v2194_v55 = vpop.permute.xlu1 %960 }
  0xc2   : > { %v2186_v52 = vpop.permute.xlu0 %574 }
  0xc5   : > { %v2202_v57 = vpop.permute.xlu1 %993 }
  0xc7   : > { %v2192_v54 = vpop.permute.xlu0 %640 }
  0xcc   : > { %v2198_v56 = vpop.permute.xlu0 %673 }
  0xd1   : > { %v2206_v58 = vpop.permute.xlu0 %706 }
  0xd6   : > { %v2214_v61 = vpop.permute.xlu0 %739 }
  0xdb   : > { %v2222_v63 = vpop.permute.xlu0 %772 }
  0xe0   : > { %v2230_v2 = vpop.permute.xlu0 %805 }
  0xe5   : > { %v2238_v4 = vpop.permute.xlu0 %838 }
  0xea   : > { %v2246_v7 = vpop.permute.xlu0 %871 }
  0xef   : > { %v2254_v9 = vpop.permute.xlu0 %904 }
  0xf4   : > { %v2262_v12 = vpop.permute.xlu0 %937 }
  0xf9   : > { %v2270_v14 = vpop.permute.xlu0 %1026 }
  0xfe   : > { %v2278_v17 = vpop.permute.xlu0 %1059 }
 0x103   : > { %v2286_v19 = vpop.permute.xlu0 %1092 }
 0x108   : > { %v2297_v23 = vpop.permute.xlu0 %1125 }
 0x10d   : > { %v2299_v25 = vpop.permute.xlu0 %1158 }
 0x117   : > { %v514_v29 = vpop.f32.mrb[0].mxu0 }
 0x118   : > { %v525_v30 = vmul.f32 %v523_v28, %v514_v29  ;;  %v516_v31 = vpop.f32.mrb[1].mxu0  ;;  %v2303_v29 = vpop.permute.xlu0 %1191 }
 0x119   : > { %v526_v33 = vmul.f32 %v523_v28, %v516_v31  ;;  %2622 = vst [vmem:[#allocation8_spill] sm:$0xff] %v2303_v29 }
 0x11a   : > { %v533_v34 = vadd.f32 %v531_v32, %v525_v30  ;;  %v561_v30 = vshrl.u32 %v560_v27, 7  ;;  %v658_v27 = vld [vmem:[#allocation2 + $0x3] ss:$8 sm:$0x3] }
 0x11b   : > { %v534_v35 = vadd.f32 %v531_v32, %v526_v33  ;;  %v592_v32 = vld [vmem:[#allocation2 + $0x1] ss:$8 sm:$0x3] }
 0x11c   : > { %v535_v36 = vadd.f32 3.0, %v533_v34  ;;  %v2307_v33 = vsub.s32 0, %v561_v30 }
 0x11d   : > { %v536_v37 = vadd.f32 3.0, %v534_v35 }
 0x11e   : > { %v537_v38 = vmax.f32 %v535_v36, 0.0 }
 0x11f   : > { %v538_v39 = vmax.f32 %v536_v37, 0.0  ;;  %v558_v37 = vld [vmem:[#allocation2] ss:$8 sm:$0x3] }
 0x120   : > { %v539_v40 = vmin.f32 %v537_v38, 6.0  ;;  %v597_v38 = vrot.slane %v592_v32, %v2307_v33 }
 0x121   : > { %v540_v41 = vmin.f32 %v538_v39, 6.0 }
 0x122   : > { %v541_v42 = vmul.f32 %v539_v40, %v533_v34  ;;  %v2309_v34 = vsub.s32 1, %v561_v30 }
 0x123   : > { %v542_v43 = vmul.f32 %v540_v41, %v534_v35 }
 0x124   : > { %v2114_v44 = vmul.f32 0.16666667, %v541_v42  ;;  %v601_v39 = vrot.slane %v592_v32, %v2309_v34  ;;  %v563_v42 = vrot.slane %v558_v37, %v2307_v33 }
 0x125   : > { %v2116_v45 = vmul.f32 0.16666667, %v542_v43  ;;  %v567_v43 = vrot.slane %v558_v37, %v2309_v34 }
 0x126   : > { %584 = vrot.lane.b32.xlu0 %v2114_v44, %s1901_s23  ;;  %551 = vrot.lane.b32.xlu1 %v2114_v44, %s1902_s14 }
 0x127   : > { %v1389_v46 = vcombine.low %v2114_v44, %v2116_v45 }
 0x129   : > { %1391 = vst [vmem:[%s2124_s20] sm:$0xff] %v1389_v46 }
 0x12a   : > { %617 = vrot.lane.b32.xlu1 %v2114_v44, %s1903_s16  ;;  %614 = vrot.lane.b32.xlu0 %v2116_v45, %s1903_s16  ;;  %s2591_s16 = smov 94  }
 0x12e   : > { %650 = vrot.lane.b32.xlu1 %v2114_v44, %s1904_s21  ;;  %1224 = vperm.xlu0 %1756, %v2082_v6  }
 0x132   : > { %683 = vrot.lane.b32.xlu1 %v2114_v44, %s1905_s24  ;;  %1757 = vset.pattern.permute.xlu0 %v1906_v47  ;;  %v625_v47 = vld [vmem:[#allocation2 + $0x2] ss:$8 sm:$0x3] }
 0x133   : > { %1257 = vperm.xlu0 %1757, %v2082_v6   ;;  %v630_v30 = vrot.slane %v625_v47, %v2307_v33 }
 0x136   : > { %716 = vrot.lane.b32.xlu1 %v2114_v44, %s2592_s25  ;;  %s2595_s25 = smov 114  }
 0x137   : > { %1758 = vset.pattern.permute.xlu0 %v1908_v48 }
 0x138   : > { %1290 = vperm.xlu0 %1758, %v2082_v6  }
 0x13a   : > { %749 = vrot.lane.b32.xlu1 %v2114_v44, %s2589_s11  ;;  %s1923_s11 = smov 111  }
 0x13c   : > { %1759 = vset.pattern.permute.xlu0 %v1910_v49 }
 0x13d   : > { %1323 = vperm.xlu0 %1759, %v2082_v6  }
 0x13e   : > { %782 = vrot.lane.b32.xlu1 %v2114_v44, %s2587_s12  ;;  %s2594_s12 = smov 1  }
 0x141   : > { %1760 = vset.pattern.permute.xlu0 %v1912_v50 }
 0x142   : > { %815 = vrot.lane.b32.xlu1 %v2114_v44, %s2588_s26  ;;  %1356 = vperm.xlu0 %1760, %v2082_v6   ;;  %s1924_s26 = smov 110  }
 0x146   : > { %848 = vrot.lane.b32.xlu1 %v2114_v44, %s2590_s19  ;;  %1330 = vrot.lane.b32.xlu0 %v2114_v44, %s2591_s16  ;;  %s1918_s19 = smov 127   ;;  %s1919_s16 = smov 126  }
 0x147   : > { %1761 = vset.pattern.permute.xlu0 %v1880_v1 }
 0x14a   : > { %881 = vrot.lane.b32.xlu1 %v2114_v44, %s2593_s22  ;;  %1366 = vperm.xlu0 %1761, %v1363_v51   ;;  %s2596_s22 = smov 113  }
 0x14e   : > { %914 = vrot.lane.b32.xlu1 %v2114_v44, %s2594_s12  ;;  %s2597_s12 = smov 112  }
 0x152   : > { %967 = vrot.lane.b32.xlu1 %v2114_v44, %s1918_s19 }
 0x156   : > { %1000 = vrot.lane.b32.xlu1 %v2114_v44, %s1919_s16 }
 0x15a   : > { %1033 = vrot.lane.b32.xlu1 %v2114_v44, %s2595_s25  ;;  %s1925_s25 = smov 98  }
 0x15e   : > { %1066 = vrot.lane.b32.xlu1 %v2114_v44, %s2596_s22  ;;  %s1926_s22 = smov 97  }
 0x162   : > { %1099 = vrot.lane.b32.xlu1 %v2114_v44, %s2597_s12  ;;  %s1927_s12 = smov 96  }
 0x166   : > { %1132 = vrot.lane.b32.xlu1 %v2114_v44, %s1923_s11 }
 0x16a   : > { %547 = vrot.lane.b32.xlu1 %v2116_v45, %s1902_s14  ;;  %s2598_s14 = smov 95  }
 0x16e   : > { %581 = vrot.lane.b32.xlu1 %v2116_v45, %s1901_s23  ;;  %s2610_s23 = smov 18  }
 0x172   : > { %1165 = vrot.lane.b32.xlu1 %v2114_v44, %s1924_s26 }
 0x176   : > { %1198 = vrot.lane.b32.xlu1 %v2114_v44, %s1925_s25 }
 0x17a   : > { %1231 = vrot.lane.b32.xlu1 %v2114_v44, %s1926_s22 }
 0x17e   : > { %1264 = vrot.lane.b32.xlu1 %v2114_v44, %s1927_s12 }
 0x182   : > { %1297 = vrot.lane.b32.xlu1 %v2114_v44, %s2598_s14  ;;  %s2611_s14 = smov 17  }
 0x186   : > { %647 = vrot.lane.b32.xlu1 %v2116_v45, %s1904_s21  ;;  %s2612_s21 = smov 16  }
 0x18a   : > { %680 = vrot.lane.b32.xlu1 %v2116_v45, %s1905_s24  ;;  %s2613_s24 = smov 15  }
 0x18e   : > { %713 = vrot.lane.b32.xlu1 %v2116_v45, %s2610_s23  ;;  %s2614_s23 = smov 14  }
 0x192   : > { %746 = vrot.lane.b32.xlu1 %v2116_v45, %s2611_s14  ;;  %s2615_s14 = smov 2  }
 0x196   : > { %779 = vrot.lane.b32.xlu1 %v2116_v45, %s2612_s21  ;;  %s2616_s21 = smov 1  }
 0x198   : > { %v2208_v59 = vpop.permute.xlu1 %551  ;;  %v585_v35 = vpop.permute.xlu0 %584 }
 0x19a   : > { %812 = vrot.lane.b32.xlu1 %v2116_v45, %s2613_s24  ;;  %s2617_s24 = smov 114  }
 0x19c   : > { %v2212_v60 = vpop.permute.xlu1 %617  ;;  %v615_v50 = vpop.permute.xlu0 %614 }
 0x19d   : > { %v620_v37 = vsel %vm619_vm4, %v2212_v60, %v615_v50 }
 0x19e   : > { %845 = vrot.lane.b32.xlu1 %v2116_v45, %s2614_s23  ;;  %s2618_s23 = smov 113  }
 0x1a0   : > { %v2218_v62 = vpop.permute.xlu1 %650 }
 0x1a2   : > { %878 = vrot.lane.b32.xlu1 %v2116_v45, %s2615_s14 }
 0x1a4   : > { %v2224_v0 = vpop.permute.xlu1 %683 }
 0x1a6   : > { %911 = vrot.lane.b32.xlu1 %v2116_v45, %s2616_s21 }
 0x1a8   : > { %v2228_v1 = vpop.permute.xlu1 %716 }
 0x1aa   : > { %969 = vrot.lane.b32.xlu1 %v2116_v45, %s1918_s19  ;;  %s2619_s19 = smov 112  }
 0x1ac   : > { %v2234_v3 = vpop.permute.xlu1 %749 }
 0x1ae   : > { %1002 = vrot.lane.b32.xlu1 %v2116_v45, %s1919_s16  ;;  %s2620_s16 = smov 95  }
 0x1b0   : > { %v2240_v5 = vpop.permute.xlu1 %782 }
 0x1b2   : > { %1035 = vrot.lane.b32.xlu1 %v2116_v45, %s2617_s24 }
 0x1b4   : > { %v2244_v6 = vpop.permute.xlu1 %815 }
 0x1b6   : > { %1068 = vrot.lane.b32.xlu1 %v2116_v45, %s2618_s23  ;;  %s2630_s23 = sand.u32 1, %s1858_s28  }
 0x1b8   : > { %v2250_v8 = vpop.permute.xlu1 %848 }
 0x1ba   : > { %1101 = vrot.lane.b32.xlu1 %v2116_v45, %s2619_s19  ;;  %s2527_s19 = scalar_lea.sflag [#allocation4], %s2630_s23 }
 0x1bc   : > { %v2256_v10 = vpop.permute.xlu1 %881 }
 0x1be   : > { %1134 = vrot.lane.b32.xlu1 %v2116_v45, %s1923_s11 }
 0x1c0   : > { %v2260_v11 = vpop.permute.xlu1 %914 }
 0x1c2   : > { %1167 = vrot.lane.b32.xlu1 %v2116_v45, %s1924_s26  ;;  %s1615_s26 = sshll.u32 %s1866_s30, 8  ;;  %s1929_s30 = smov [#allocation5]  }
 0x1c3   : > { %s2522_s24 = scalar_lea.hbm %s2581_s8, %s1615_s26 }
 0x1c4   : > { %v2266_v13 = vpop.permute.xlu1 %967 }
 0x1c6   : > { %1200 = vrot.lane.b32.xlu1 %v2116_v45, %s1925_s25  ;;  %s2621_s25 = smov 94  }
 0x1c8   : > { %v2272_v15 = vpop.permute.xlu1 %1000 }
 0x1ca   : > { %1233 = vrot.lane.b32.xlu1 %v2116_v45, %s1926_s22 }
 0x1cc   : > { %v2276_v16 = vpop.permute.xlu1 %1033 }
 0x1ce   : > { %1266 = vrot.lane.b32.xlu1 %v2116_v45, %s1927_s12  ;;  %s1414_s12 = sshll.u32 %s2124_s20, 4  ;;  %s2517_s12 = int_to_ptr.vmem [resolvable:$true] %s1414_s12 }
 0x1d0   : > { %v2282_v18 = vpop.permute.xlu1 %1066 }
 0x1d2   : > { %1299 = vrot.lane.b32.xlu1 %v2116_v45, %s2620_s16  ;;  %s1792_s16 = scalar_lea.vmem %s2517_s12, 256 }
 0x1d3   : > { %p1793_p8 = scmp.ne.s32.totalorder %s2517_s12, %s1792_s16 }
 0x1d4   : > { %v2288_v20 = vpop.permute.xlu1 %1099 }
 0x1d5   : > { %p1794_p11 = pnand %p1793_p8, %p2631_p10 }
 0x1d6   : > { %1332 = vrot.lane.b32.xlu1 %v2116_v45, %s2621_s25  ;;  %s1796_s25 = sshll.u32 %s1929_s30, 4  ;;  %s1797_s25 = int_to_ptr.vmem [resolvable:$false] %s1796_s25 }
 0x1d7   : > { %p1795_p13 = pneg %p1794_p11  ;;  %s1798_s22 = scalar_lea.vmem %s1797_s25, 512 }
 0x1d8   : > { %v2295_v22 = vpop.permute.xlu1 %1132  ;;  %p1799_p1 = scmp.lt.s32.totalorder %s2517_s12, %s1797_s25  ;;  %p1800_p3 = scmp.lt.s32.totalorder %s1798_s22, %s1792_s16 }
 0x1da   : > { %1374 = vperm.xlu1 %1762, %v1371_v21   ;;  %p1801_p5 = por %p1800_p3, %p1799_p1 }
 0x1dc   : > { %v548_v24 = vpop.permute.xlu1 %547  ;;  %p1802_p6 = pnand %p1801_p5, %p1795_p13 }
 0x1dd   : > { %v554_v48 = vsel %vm553_vm3, %v2208_v59, %v548_v24  ;;  %v557_v49 = vsel %vm553_vm3, %v548_v24, %v2208_v59  ;;  %vm1136_vm3 = vcmask 908288  }
 0x1de   : > { %v570_v32 = vmul.f32 %v563_v42, %v557_v49 }
 0x1e0   : > { %v582_v26 = vpop.permute.xlu1 %581 }
 0x1e1   : > { %v587_v40 = vsel %vm586_vm2, %v585_v35, %v582_v26  ;;  %v590_v41 = vsel %vm586_vm2, %v582_v26, %v585_v35  ;;  %v634_v26 = vrot.slane %v625_v47, %v2309_v34  ;;  %v571_v35 = vmul.f32 %v567_v43, %v554_v48 }
 0x1e2   : > { %v604_v51 = vmul.f32 %v597_v38, %v590_v41  ;;  %v605_v21 = vmul.f32 %v601_v39, %v587_v40  ;;  %v663_v38 = vrot.slane %v658_v27, %v2307_v33  ;;  %v667_v39 = vrot.slane %v658_v27, %v2309_v34  ;;  %v691_v40 = vld [vmem:[#allocation2 + $0x4] ss:$8 sm:$0x3] }
 0x1e3   : > { %v638_v42 = vmul.f32 %v634_v26, %v620_v37  ;;  %v577_v43 = vmul.f32 %v2186_v52, %v570_v32  ;;  %v578_v47 = vmul.f32 %v2186_v52, %v571_v35  ;;  %vm1103_vm2 = vcmask 916480  }
 0x1e4   : > { %v2301_v28 = vpop.permute.xlu1 %1165  ;;  %v610_v59 = vmul.f32 %v2188_v53, %v604_v51  ;;  %v611_v24 = vmul.f32 %v2188_v53, %v605_v21  ;;  %v700_v53 = vrot.slane %v691_v40, %v2309_v34 }
 0x1e6   : > { %v612_v51 = vadd.f32 %v610_v59, %v577_v43  ;;  %v613_v21 = vadd.f32 %v611_v24, %v578_v47 }
 0x1e8   : > { %v2305_v31 = vpop.permute.xlu1 %1198 }
 0x1ec   : > { %v2311_v36 = vpop.permute.xlu1 %1231 }
 0x1ed   : > { %2623 = vst [vmem:[#allocation9_spill] sm:$0xff] %v2311_v36  ;;  %v724_v36 = vld [vmem:[#allocation2 + $0x5] ss:$8 sm:$0x3] }
 0x1ee   : > { %v729_v37 = vrot.slane %v724_v36, %v2307_v33  ;;  %v733_v59 = vrot.slane %v724_v36, %v2309_v34 }
 0x1f0   : > { %v2317_v46 = vpop.permute.xlu1 %1264 }
 0x1f1   : > { %2624 = vst [vmem:[#allocation10_spill] sm:$0xff] %v2317_v46  ;;  %v623_v46 = vsel %vm619_vm4, %v615_v50, %v2212_v60  ;;  %v696_v50 = vrot.slane %v691_v40, %v2307_v33  ;;  %vm1169_vm4 = vcmask 900096  }
 0x1f2   : > { %v637_v41 = vmul.f32 %v630_v30, %v623_v46  ;;  %v644_v30 = vmul.f32 %v2192_v54, %v638_v42 }
 0x1f4   : > { %v2323_v29 = vpop.permute.xlu1 %1297  ;;  %v643_v46 = vmul.f32 %v2192_v54, %v637_v41 }
 0x1f5   : > { %2625 = vst [vmem:[#allocation11_spill] sm:$0xff] %v2323_v29 }
 0x1f6   : > { %v645_v24 = vadd.f32 %v643_v46, %v612_v51 }
 0x1f8   : > { %v648_v48 = vpop.permute.xlu1 %647 }
 0x1f9   : > { %v653_v60 = vsel %vm652_vm5, %v2218_v62, %v648_v48  ;;  %v656_v49 = vsel %vm652_vm5, %v648_v48, %v2218_v62  ;;  %vm1202_vm5 = vcmask 801792  }
 0x1fa   : > { %v670_v27 = vmul.f32 %v663_v38, %v656_v49  ;;  %v671_v29 = vmul.f32 %v667_v39, %v653_v60  ;;  %v646_v38 = vadd.f32 %v644_v30, %v613_v21 }
 0x1fc   : > { %v676_v52 = vmul.f32 %v2198_v56, %v670_v27  ;;  %v677_v26 = vmul.f32 %v2198_v56, %v671_v29  ;;  %v681_v32 = vpop.permute.xlu1 %680  ;;  %v790_v27 = vld [vmem:[#allocation2 + $0x7] ss:$8 sm:$0x3] }
 0x1fd   : > { %v686_v62 = vsel %vm685_vm6, %v2224_v0, %v681_v32  ;;  %v689_v35 = vsel %vm685_vm6, %v681_v32, %v2224_v0  ;;  %v795_v32 = vrot.slane %v790_v27, %v2307_v33  ;;  %vm1235_vm6 = vcmask 793600  }
 0x1fe   : > { %v703_v39 = vmul.f32 %v696_v50, %v689_v35  ;;  %v704_v40 = vmul.f32 %v700_v53, %v686_v62  ;;  %v678_v54 = vadd.f32 %v676_v52, %v645_v24  ;;  %v679_v41 = vadd.f32 %v677_v26, %v646_v38  ;;  %v757_v53 = vld [vmem:[#allocation2 + $0x6] ss:$8 sm:$0x3]  ;;  %v823_v62 = vld [vmem:[#allocation2 + $0x10] ss:$8 sm:$0x3] }
 0x1ff   : > { %v762_v46 = vrot.slane %v757_v53, %v2307_v33  ;;  %v766_v30 = vrot.slane %v757_v53, %v2309_v34  ;;  %v856_v38 = vld [vmem:[#allocation2 + $0x11] ss:$8 sm:$0x3] }
 0x200   : > { %v709_v42 = vmul.f32 %v2206_v58, %v703_v39  ;;  %v710_v56 = vmul.f32 %v2206_v58, %v704_v40  ;;  %v714_v29 = vpop.permute.xlu1 %713  ;;  %v828_v39 = vrot.slane %v823_v62, %v2307_v33  ;;  %v832_v40 = vrot.slane %v823_v62, %v2309_v34 }
 0x201   : > { %v719_v43 = vsel %vm718_vm7, %v2228_v1, %v714_v29  ;;  %v722_v0 = vsel %vm718_vm7, %v714_v29, %v2228_v1  ;;  %vm1268_vm7 = vcmask 785408  }
 0x202   : > { %v711_v47 = vadd.f32 %v709_v42, %v678_v54  ;;  %v712_v48 = vadd.f32 %v710_v56, %v679_v41  ;;  %v736_v36 = vmul.f32 %v729_v37, %v722_v0  ;;  %v737_v60 = vmul.f32 %v733_v59, %v719_v43 }
 0x203   : > { %v861_v43 = vrot.slane %v856_v38, %v2307_v33 }
 0x204   : > { %v742_v49 = vmul.f32 %v2214_v61, %v736_v36  ;;  %v743_v50 = vmul.f32 %v2214_v61, %v737_v60  ;;  %v747_v51 = vpop.permute.xlu1 %746  ;;  %v799_v61 = vrot.slane %v790_v27, %v2309_v34 }
 0x205   : > { %v752_v1 = vsel %vm751_vm8, %v2234_v3, %v747_v51  ;;  %v755_v52 = vsel %vm751_vm8, %v747_v51, %v2234_v3  ;;  %v945_v3 = vld [vmem:[#allocation2 + $0x14] ss:$8 sm:$0x3]  ;;  %vm1301_vm8 = vcmask 777216  }
 0x206   : > { %v744_v21 = vadd.f32 %v742_v49, %v711_v47  ;;  %v745_v58 = vadd.f32 %v743_v50, %v712_v48  ;;  %v769_v59 = vmul.f32 %v762_v46, %v755_v52  ;;  %v770_v24 = vmul.f32 %v766_v30, %v752_v1  ;;  %v889_v48 = vld [vmem:[#allocation2 + $0x12] ss:$8 sm:$0x3]  ;;  %v922_v46 = vld [vmem:[#allocation2 + $0x13] ss:$8 sm:$0x3] }
 0x207   : > { %v950_v36 = vrot.slane %v945_v3, %v2307_v33  ;;  %v898_v52 = vrot.slane %v889_v48, %v2309_v34 }
 0x208   : > { %v780_v26 = vpop.permute.xlu1 %779  ;;  %v775_v0 = vmul.f32 %v2222_v63, %v769_v59  ;;  %v776_v47 = vmul.f32 %v2222_v63, %v770_v24  ;;  %v894_v63 = vrot.slane %v889_v48, %v2307_v33 }
 0x209   : > { %v785_v35 = vsel %vm784_vm9, %v2240_v5, %v780_v26  ;;  %v788_v37 = vsel %vm784_vm9, %v780_v26, %v2240_v5  ;;  %v865_v5 = vrot.slane %v856_v38, %v2309_v34  ;;  %v954_v26 = vrot.slane %v945_v3, %v2309_v34 }
 0x20a   : > { %v802_v41 = vmul.f32 %v795_v32, %v788_v37  ;;  %v803_v42 = vmul.f32 %v799_v61, %v785_v35  ;;  %v777_v32 = vadd.f32 %v775_v0, %v744_v21  ;;  %v778_v61 = vadd.f32 %v776_v47, %v745_v58 }
 0x20b   : > { %v927_v37 = vrot.slane %v922_v46, %v2307_v33  ;;  %vm1334_vm9 = vcmask 769024  }
 0x20c   : > { %v813_v54 = vpop.permute.xlu1 %812  ;;  %v808_v53 = vmul.f32 %v2230_v2, %v802_v41 }
 0x20d   : > { %v818_v56 = vsel %vm817_vm10, %v2244_v6, %v813_v54  ;;  %v821_v29 = vsel %vm817_vm10, %v813_v54, %v2244_v6  ;;  %v809_v6 = vmul.f32 %v2230_v2, %v803_v42 }
 0x20e   : > { %v835_v60 = vmul.f32 %v828_v39, %v821_v29  ;;  %v836_v49 = vmul.f32 %v832_v40, %v818_v56  ;;  %v810_v59 = vadd.f32 %v808_v53, %v777_v32  ;;  %v957_v29 = vmul.f32 %v950_v36, %v2114_v44 }
 0x20f   : > { %v811_v24 = vadd.f32 %v809_v6, %v778_v61 }
 0x210   : > { %v846_v50 = vpop.permute.xlu1 %845  ;;  %v841_v62 = vmul.f32 %v2238_v4, %v835_v60  ;;  %v842_v2 = vmul.f32 %v2238_v4, %v836_v49  ;;  %v963_v44 = vmul.f32 %v2194_v55, %v957_v29 }
 0x211   : > { %v851_v51 = vsel %vm850_vm11, %v2250_v8, %v846_v50  ;;  %v854_v27 = vsel %vm850_vm11, %v846_v50, %v2250_v8  ;;  %v931_v8 = vrot.slane %v922_v46, %v2309_v34 }
 0x212   : > { %v868_v30 = vmul.f32 %v861_v43, %v854_v27  ;;  %v869_v1 = vmul.f32 %v865_v5, %v851_v51  ;;  %v843_v4 = vadd.f32 %v841_v62, %v810_v59  ;;  %v844_v3 = vadd.f32 %v842_v2, %v811_v24  ;;  %v1077_v2 = vld [vmem:[#allocation2 + $0x20] ss:$8 sm:$0x3]  ;;  %v1110_v24 = vld [vmem:[#allocation2 + $0x21] ss:$8 sm:$0x3] }
 0x213   : > { %v958_v43 = vmul.f32 %v954_v26, %v2116_v45  ;;  %v1044_v26 = vld [vmem:[#allocation2 + $0x17] ss:$8 sm:$0x3] }
 0x214   : > { %v879_v35 = vpop.permute.xlu1 %878  ;;  %v874_v21 = vmul.f32 %v2246_v7, %v868_v30  ;;  %v875_v58 = vmul.f32 %v2246_v7, %v869_v1  ;;  %v2405_v1 = vpop.permute.xlu0 %1224  ;;  %v1049_v59 = vrot.slane %v1044_v26, %v2307_v33 }
 0x215   : > { %v884_v38 = vsel %vm883_vm12, %v2256_v10, %v879_v35  ;;  %v887_v39 = vsel %vm883_vm12, %v879_v35, %v2256_v10  ;;  %v964_v45 = vmul.f32 %v2194_v55, %v958_v43 }
 0x216   : > { %v901_v40 = vmul.f32 %v894_v63, %v887_v39  ;;  %v902_v54 = vmul.f32 %v898_v52, %v884_v38  ;;  %v876_v7 = vadd.f32 %v874_v21, %v843_v4  ;;  %v877_v0 = vadd.f32 %v875_v58, %v844_v3  ;;  %v978_v63 = vld [vmem:[#allocation2 + $0x15] ss:$8 sm:$0x3]  ;;  %v1143_v3 = vld [vmem:[#allocation2 + $0x22] ss:$8 sm:$0x3] }
 0x217   : > { %v983_v32 = vrot.slane %v978_v63, %v2307_v33  ;;  %v987_v55 = vrot.slane %v978_v63, %v2309_v34  ;;  %v1053_v58 = vrot.slane %v1044_v26, %v2309_v34  ;;  %v1086_v4 = vrot.slane %v1077_v2, %v2309_v34 }
 0x218   : > { %v907_v41 = vmul.f32 %v2254_v9, %v901_v40  ;;  %v908_v42 = vmul.f32 %v2254_v9, %v902_v54  ;;  %v912_v56 = vpop.permute.xlu1 %911  ;;  %v2411_v35 = vpop.permute.xlu0 %1257  ;;  %v1082_v54 = vrot.slane %v1077_v2, %v2307_v33 }
 0x219   : > { %v917_v10 = vsel %vm916_vm13, %v2260_v11, %v912_v56  ;;  %v920_v5 = vsel %vm916_vm13, %v912_v56, %v2260_v11  ;;  %v1119_v56 = vrot.slane %v1110_v24, %v2309_v34 }
 0x21a   : > { %v934_v47 = vmul.f32 %v927_v37, %v920_v5  ;;  %v935_v48 = vmul.f32 %v931_v8, %v917_v10  ;;  %v909_v60 = vadd.f32 %v907_v41, %v876_v7  ;;  %v910_v49 = vadd.f32 %v908_v42, %v877_v0  ;;  %v2421_v41 = vld [vmem:[#allocation2 + $0x23] ss:$8 sm:$0x3] }
 0x21b   : > { %v1115_v42 = vrot.slane %v1110_v24, %v2307_v33  ;;  %v1148_v7 = vrot.slane %v1143_v3, %v2307_v33  ;;  %v1152_v0 = vrot.slane %v1143_v3, %v2309_v34 }
 0x21c   : > { %v940_v50 = vmul.f32 %v2262_v12, %v934_v47  ;;  %v941_v9 = vmul.f32 %v2262_v12, %v935_v48  ;;  %v970_v53 = vpop.permute.xlu1 %969  ;;  %v1011_v12 = vld [vmem:[#allocation2 + $0x16] ss:$8 sm:$0x3]  ;;  %v1181_v47 = vrot.slane %v2421_v41, %v2307_v33  ;;  %v2433_v48 = vld [vmem:[#allocation2 + $0x24] ss:$8 sm:$0x3] }
 0x21d   : > { %v972_v61 = vsel %vm971_vm14, %v2266_v13, %v970_v53  ;;  %v976_v62 = vsel %vm971_vm14, %v970_v53, %v2266_v13  ;;  %v1016_v37 = vrot.slane %v1011_v12, %v2307_v33  ;;  %v1020_v8 = vrot.slane %v1011_v12, %v2309_v34 }
 0x21e   : > { %v942_v36 = vadd.f32 %v940_v50, %v909_v60  ;;  %v943_v6 = vadd.f32 %v941_v9, %v910_v49  ;;  %v990_v13 = vmul.f32 %v983_v32, %v972_v61  ;;  %v991_v40 = vmul.f32 %v987_v55, %v976_v62  ;;  %v2435_v60 = vpop.permute.xlu0 %1290 }
 0x220   : > { %v2401_v51 = vadd.f32 %v963_v44, %v942_v36  ;;  %v2403_v11 = vadd.f32 %v964_v45, %v943_v6  ;;  %v1003_v27 = vpop.permute.xlu1 %1002  ;;  %v996_v49 = vmul.f32 %v2202_v57, %v990_v13  ;;  %v997_v50 = vmul.f32 %v2202_v57, %v991_v40  ;;  %v2445_v36 = vld [vmem:[#allocation2 + $0x25] ss:$8 sm:$0x3]  ;;  %v1308_v40 = vld [vmem:[#allocation2 + $0x27] ss:$8 sm:$0x3] }
 0x221   : > { %v1005_v39 = vsel %vm1004_vm15, %v2272_v15, %v1003_v27  ;;  %v1009_v21 = vsel %vm1004_vm15, %v1003_v27, %v2272_v15  ;;  %v1185_v45 = vrot.slane %v2421_v41, %v2309_v34  ;;  %v1214_v57 = vrot.slane %v2433_v48, %v2307_v33 }
 0x222   : > { %v1023_v29 = vmul.f32 %v1016_v37, %v1005_v39  ;;  %v1024_v15 = vmul.f32 %v1020_v8, %v1009_v21  ;;  %v998_v32 = vadd.f32 %v996_v49, %v2401_v51  ;;  %v999_v55 = vadd.f32 %v997_v50, %v2403_v11  ;;  %v2467_v8 = vpop.permute.xlu0 %1323 }
 0x223   : > { %v1251_v11 = vrot.slane %v2445_v36, %v2309_v34 }
 0x224   : > { %v1036_v46 = vpop.permute.xlu1 %1035  ;;  %v1029_v6 = vmul.f32 %v2270_v14, %v1023_v29  ;;  %v1030_v27 = vmul.f32 %v2270_v14, %v1024_v15  ;;  %v1247_v14 = vrot.slane %v2445_v36, %v2307_v33  ;;  %v2627_v36 = vld [vmem:[#allocation8_spill] sm:$0xff] }
 0x225   : > { %v1038_v43 = vsel %vm1037_vm0, %v2276_v16, %v1036_v46  ;;  %v1042_v10 = vsel %vm1037_vm0, %v1036_v46, %v2276_v16  ;;  %v1218_v46 = vrot.slane %v2433_v48, %v2309_v34 }
 0x226   : > { %v1056_v53 = vmul.f32 %v1049_v59, %v1038_v43  ;;  %v1057_v44 = vmul.f32 %v1053_v58, %v1042_v10  ;;  %v1275_v59 = vld [vmem:[#allocation2 + $0x26] ss:$8 sm:$0x3]  ;;  %v1031_v24 = vadd.f32 %v1029_v6, %v998_v32  ;;  %v1032_v39 = vadd.f32 %v1030_v27, %v999_v55 }
 0x227   : > { %v1280_v3 = vrot.slane %v1275_v59, %v2307_v33  ;;  %v1284_v41 = vrot.slane %v1275_v59, %v2309_v34  ;;  %v1313_v10 = vrot.slane %v1308_v40, %v2307_v33 }
 0x228   : > { %v1069_v30 = vpop.permute.xlu1 %1068  ;;  %v1062_v61 = vmul.f32 %v2278_v17, %v1056_v53  ;;  %v1063_v62 = vmul.f32 %v2278_v17, %v1057_v44  ;;  %v1317_v44 = vrot.slane %v1308_v40, %v2309_v34 }
 0x229   : > { %v1071_v16 = vsel %vm1070_vm1, %v2282_v18, %v1069_v30  ;;  %v1075_v9 = vsel %vm1070_vm1, %v1069_v30, %v2282_v18 }
 0x22a   : > { %v1089_v18 = vmul.f32 %v1082_v54, %v1071_v16  ;;  %v1090_v30 = vmul.f32 %v1086_v4, %v1075_v9  ;;  %v1064_v54 = vadd.f32 %v1062_v61, %v1031_v24  ;;  %v1065_v4 = vadd.f32 %v1063_v62, %v1032_v39  ;;  %v2626_v16 = vld [vmem:[#allocation9_spill] sm:$0xff]  ;;  %v2629_v61 = vld [vmem:[#allocation11_spill] sm:$0xff] }
 0x22c   : > { %v1102_v52 = vpop.permute.xlu1 %1101  ;;  %v1095_v17 = vmul.f32 %v2286_v19, %v1089_v18  ;;  %v1096_v21 = vmul.f32 %v2286_v19, %v1090_v30 }
 0x22d   : > { %v1104_v12 = vsel %vm1103_vm2, %v2288_v20, %v1102_v52  ;;  %v1108_v26 = vsel %vm1103_vm2, %v1102_v52, %v2288_v20 }
 0x22e   : > { %v1122_v20 = vmul.f32 %v1115_v42, %v1104_v12  ;;  %v1123_v51 = vmul.f32 %v1119_v56, %v1108_v26 }
 0x230   : > { %v1135_v38 = vpop.permute.xlu1 %1134  ;;  %v1128_v42 = vmul.f32 %v2297_v23, %v1122_v20  ;;  %v1129_v56 = vmul.f32 %v2297_v23, %v1123_v51 }
 0x231   : > { %v1137_v2 = vsel %vm1136_vm3, %v2295_v22, %v1135_v38  ;;  %v1141_v37 = vsel %vm1136_vm3, %v1135_v38, %v2295_v22 }
 0x232   : > { %v1155_v58 = vmul.f32 %v1148_v7, %v1137_v2  ;;  %v1156_v13 = vmul.f32 %v1152_v0, %v1141_v37  ;;  %v1097_v7 = vadd.f32 %v1095_v17, %v1064_v54  ;;  %v1098_v0 = vadd.f32 %v1096_v21, %v1065_v4 }
 0x234   : > { %v1168_v5 = vpop.permute.xlu1 %1167  ;;  %v1161_v48 = vmul.f32 %v2299_v25, %v1155_v58  ;;  %v1162_v49 = vmul.f32 %v2299_v25, %v1156_v13  ;;  %v1131_v53 = vadd.f32 %v1129_v56, %v1098_v0 }
 0x235   : > { %v1170_v22 = vsel %vm1169_vm4, %v2301_v28, %v1168_v5  ;;  %v1174_v38 = vsel %vm1169_vm4, %v1168_v5, %v2301_v28  ;;  %v1357_v5 = vpop.permute.xlu0 %1356 }
 0x236   : > { %v1188_v43 = vmul.f32 %v1181_v47, %v1170_v22  ;;  %v1189_v28 = vmul.f32 %v1185_v45, %v1174_v38  ;;  %v1130_v47 = vadd.f32 %v1128_v42, %v1097_v7  ;;  %v1164_v30 = vadd.f32 %v1162_v49, %v1131_v53 }
 0x238   : > { %v1201_v63 = vpop.permute.xlu1 %1200  ;;  %v1194_v6 = vmul.f32 %v2627_v36, %v1188_v43  ;;  %v1195_v27 = vmul.f32 %v2627_v36, %v1189_v28  ;;  %v1163_v18 = vadd.f32 %v1161_v48, %v1130_v47 }
 0x239   : > { %v1203_v19 = vsel %vm1202_vm5, %v2305_v31, %v1201_v63  ;;  %v1207_v29 = vsel %vm1202_vm5, %v1201_v63, %v2305_v31  ;;  %v2628_v63 = vld [vmem:[#allocation10_spill] sm:$0xff]  ;;  %v1331_v37 = vpop.permute.xlu0 %1330 }
 0x23a   : > { %v1221_v23 = vmul.f32 %v1214_v57, %v1203_v19  ;;  %v1222_v50 = vmul.f32 %v1218_v46, %v1207_v29  ;;  %v1341_v46 = vld [vmem:[#allocation2 + $0x30] ss:$8 sm:$0x3] }
 0x23b   : > { %v1350_v59 = vrot.slane %v1341_v46, %v2309_v34 }
 0x23c   : > { %v1234_v52 = vpop.permute.xlu1 %1233  ;;  %v1227_v32 = vmul.f32 %v2405_v1, %v1221_v23  ;;  %v1228_v55 = vmul.f32 %v2405_v1, %v1222_v50 }
 0x23d   : > { %v1236_v9 = vsel %vm1235_vm6, %v2626_v16, %v1234_v52  ;;  %v1240_v31 = vsel %vm1235_vm6, %v1234_v52, %v2626_v16  ;;  %v1346_v52 = vrot.slane %v1341_v46, %v2307_v33  ;;  %v1367_v7 = vpop.permute.xlu0 %1366 }
 0x23e   : > { %v1254_v12 = vmul.f32 %v1247_v14, %v1236_v9  ;;  %v1255_v26 = vmul.f32 %v1251_v11, %v1240_v31  ;;  %v1196_v14 = vadd.f32 %v1194_v6, %v1163_v18  ;;  %v1197_v11 = vadd.f32 %v1195_v27, %v1164_v30 }
 0x240   : > { %v1267_v15 = vpop.permute.xlu1 %1266  ;;  %v1260_v17 = vmul.f32 %v2411_v35, %v1254_v12  ;;  %v1261_v21 = vmul.f32 %v2411_v35, %v1255_v26  ;;  %v1229_v22 = vadd.f32 %v1227_v32, %v1196_v14  ;;  %v1230_v38 = vadd.f32 %v1228_v55, %v1197_v11 }
 0x241   : > { %v1269_v25 = vsel %vm1268_vm7, %v2628_v63, %v1267_v15  ;;  %v1273_v57 = vsel %vm1268_vm7, %v1267_v15, %v2628_v63 }
 0x242   : > { %v1287_v20 = vmul.f32 %v1280_v3, %v1269_v25  ;;  %v1288_v51 = vmul.f32 %v1284_v41, %v1273_v57  ;;  %v1262_v4 = vadd.f32 %v1260_v17, %v1229_v22  ;;  %v1263_v3 = vadd.f32 %v1261_v21, %v1230_v38 }
 0x244   : > { %v1300_v45 = vpop.permute.xlu1 %1299  ;;  %v1293_v40 = vmul.f32 %v2435_v60, %v1287_v20  ;;  %v1294_v33 = vmul.f32 %v2435_v60, %v1288_v51 }
 0x245   : > { %v1302_v62 = vsel %vm1301_vm8, %v2629_v61, %v1300_v45  ;;  %v1306_v2 = vsel %vm1301_vm8, %v1300_v45, %v2629_v61 }
 0x246   : > { %v1320_v58 = vmul.f32 %v1313_v10, %v1302_v62  ;;  %v1321_v13 = vmul.f32 %v1317_v44, %v1306_v2  ;;  %v1295_v56 = vadd.f32 %v1293_v40, %v1262_v4  ;;  %v1296_v19 = vadd.f32 %v1294_v33, %v1263_v3 }
 0x248   : > { %v1333_v24 = vpop.permute.xlu1 %1332  ;;  %v1326_v41 = vmul.f32 %v2467_v8, %v1320_v58  ;;  %v1327_v42 = vmul.f32 %v2467_v8, %v1321_v13 }
 0x249   : > { %v1335_v39 = vsel %vm1334_vm9, %v1331_v37, %v1333_v24  ;;  %v1339_v1 = vsel %vm1334_vm9, %v1333_v24, %v1331_v37 }
 0x24a   : > { %v1353_v34 = vmul.f32 %v1346_v52, %v1335_v39  ;;  %v1354_v54 = vmul.f32 %v1350_v59, %v1339_v1  ;;  %v1328_v15 = vadd.f32 %v1326_v41, %v1295_v56  ;;  %v1329_v43 = vadd.f32 %v1327_v42, %v1296_v19 }
 0x24c   : > { %v1359_v29 = vmul.f32 %v1357_v5, %v1353_v34  ;;  %v1360_v35 = vmul.f32 %v1357_v5, %v1354_v54 }
 0x24e   : > { %v1361_v28 = vadd.f32 %v1359_v29, %v1328_v15  ;;  %v1362_v10 = vadd.f32 %v1360_v35, %v1329_v43 }
 0x250   : > { %v1369_v60 = vmul.f32 %v1367_v7, %v1361_v28  ;;  %v1370_v0 = vmul.f32 %v1367_v7, %v1362_v10 }
 0x259   : > { %v1375_v48 = vpop.permute.xlu1 %1374 }
 0x25a   : > { %v1377_v49 = vadd.f32 %v1375_v48, %v1369_v60  ;;  %v1378_v23 = vadd.f32 %v1375_v48, %v1370_v0 }
 0x25c   : > { %v1379_v50 = vadd.f32 3.0, %v1377_v49  ;;  %v1380_v8 = vadd.f32 3.0, %v1378_v23 }
 0x25e   : > { %v1381_v16 = vmax.f32 %v1379_v50, 0.0  ;;  %v1382_v9 = vmax.f32 %v1380_v8, 0.0 }
 0x260   : > { %v1383_v5 = vmin.f32 %v1381_v16, 6.0  ;;  %v1384_v31 = vmin.f32 %v1382_v9, 6.0 }
 0x262   : > { %v1385_v47 = vmul.f32 %v1383_v5, %v1377_v49  ;;  %v1386_v53 = vmul.f32 %v1384_v31, %v1378_v23 }
 0x264   : > { %v1387_v44 = vmul.f32 0.16666667, %v1385_v47  ;;  %v1388_v45 = vmul.f32 0.16666667, %v1386_v53 }
 0x266   : > { %v1394_v36 = vcombine.low %v1387_v44, %v1388_v45 }
 0x268   : > { %1608 = vst [vmem:[%s2124_s20 + $0x8] sm:$0xff] %v1394_v36 }
 0x269   : > { %1805 = shalt.err (!%p1802_p6)
}
 0x26a   : > { %s1806_s20 = scalar_lea.hbm %s2522_s24, 256  ;;  %s1810_s14 = scalar_lea.hbm %s2581_s8, 512 }
 0x26b   : > { %p1807_p7 = scmp.ne.s32.totalorder %s2522_s24, %s1806_s20  ;;  %p1811_p0 = scmp.lt.u32.totalorder %s2522_s24, %s2581_s8 }
 0x26c   : > { %p1812_p2 = scmp.lt.u32.totalorder %s1810_s14, %s1806_s20  ;;  %p1814_p8 = scmp.lt.u32.totalorder %s1806_s20, %s2522_s24 }
 0x26d   : > { %p1808_p9 = pnand %p1807_p7, %p2631_p10 }
 0x26e   : > { %p1813_p4 = por %p1812_p2, %p1811_p0 }
 0x26f   : > { %p1809_p12 = pneg %p1808_p9 }
 0x270   : > { %p1815_p11 = por %p1814_p8, %p1813_p4 }
 0x272   : > { %p1816_p13 = pnand %p1815_p11, %p1809_p12 }
 0x274   : > { %1819 = shalt.err (!%p1816_p13)
}
 0x275   : > { %s1930_s16 = smov 128   ;;  %s1931_s30 = smov 8  }
 0x276   : > { %1620 = dma.vmem_to_hbm [thread:$0]  (%p2631_p10), %s2517_s12, 256, %s2522_s24, %s2527_s19, %s1930_s16, %s1930_s16, %s1931_s30  }
 0x277 PF: > { %p1632_p1 = scmp.ge.s32.totalorder %s1874_s10, 2  ;;  %s1429_s25 = sand.u32 1, %s1854_s27  }
 0x278   : > { %p2632_p3 = scmp.ne.s32.totalorder %s2604_s17, 0  ;;  %s1430_s22 = scalar_lea.sflag [#allocation4], %s1429_s25 }
 0x27a   : > { %p1627_p5 = pnand %p1632_p1, %p2632_p3 }
 0x27c   : > { %1849 = dma.done.wait (!%p1627_p5), %s1430_s22, 256  }
 0x27d   : > { %1851 = vsyncadd (!%p1627_p5), %s1430_s22, 4294967040  ;;  %s22_s10 = sadd.s32 1, %s1874_s10   ;;  %s2633_s27 = smov %s1858_s28 }
 0x27e   : > { %p19_p6 = scmp.ge.s32.totalorder %s22_s10, 4   ;;  %s2634_s28 = smov %s1862_s29 }
 0x27f   : > { %s2635_s29 = smov %s2030_s18  ;;  %s2636_s30 = smov %s1870_s9 }
 0x280   : > { %s2637_s9 = smov %s2639_s13  ;;  %21 = sbr.rel (!%p19_p6) target bundleno = 5 (0x5), region = 135 }
 0x287   :  { %1435 = vsyncpa [#allocation3], 1 }
 0x288   :  { %1437 = vsyncpa [#allocation3 + $0x1], 1 }
 0x289   :  { %1438 = vsyncpa [#allocation4], 1 }
 0x28a   :  { %1440 = vsyncpa [#allocation4 + $0x1], 1 }

</bundles_post_ra>
